<compile_context>
chip_gen: v6e
topology: v6e:2x2x1
jax: 0.10.0
libtpu: 0.0.40
codegen_flags: <defaults>
</compile_context>

<pallas_src>
import functools

import jax
import jax.numpy as jnp
from jax.experimental import pallas as pl
from jax.experimental.pallas import tpu as pltpu


# ---------------------------------------------------------------------------
# Kernel.  refs layout (inputs, outputs, scratch):
#   x_flat (S*Bp, I),
#   [W_ih^T (in,4H), W_hh^T (H,4H), bias (1,4H)] * num_layers,
#   h0 (L,Bp,H), c0 (L,Bp,H), W_fc^T (H,Op), b_fc (1,Op),
#   out (S*Bp, Op), hN (L,Bp,H), cN (L,Bp,H),
#   hseq scratch (S*Bp, H)
# ---------------------------------------------------------------------------
def _fused_lstm_kernel(num_layers, seq_len, batch_pad, hidden, *refs):
    L, S, Bp, H = num_layers, seq_len, batch_pad, hidden

    x_ref = refs[0]
    layer_refs = refs[1:1 + 3 * L]
    h0_ref, c0_ref, wfc_ref, bfc_ref = refs[1 + 3 * L:5 + 3 * L]
    out_ref, hN_ref, cN_ref = refs[5 + 3 * L:8 + 3 * L]
    hseq_ref = refs[8 + 3 * L]

    # Weights loaded once (tiny, stay in vregs/VMEM).
    wih = [layer_refs[3 * l][...] for l in range(L)]       # (in, 4H)
    whh = [layer_refs[3 * l + 1][...] for l in range(L)]   # (H, 4H)
    bias = [layer_refs[3 * l + 2][...] for l in range(L)]  # (1, 4H)

    # --- Layer-0 input projection for ALL timesteps in one matmul ----------
    xp0 = jnp.dot(x_ref[...], wih[0],
                  preferred_element_type=jnp.float32) + bias[0]   # (S*Bp, 4H)

    # xp[l][t]: layer l's precomputed input projection for step t.
    xp = [[None] * S for _ in range(L)]
    for t in range(S):
        xp[0][t] = xp0[t * Bp:(t + 1) * Bp, :]   # static, sublane-aligned slice

    # Loop-carried per-layer state (values, not refs).
    h = [h0_ref[l] for l in range(L)]
    c = [c0_ref[l] for l in range(L)]

    def cell(l, t):
        # Only h_prev @ W_hh sits on the serial chain.
        gates = xp[l][t] + jnp.dot(h[l], whh[l],
                                   preferred_element_type=jnp.float32)  # (Bp,4H)
        # Full-width sigmoid covers i/f/o in one EUP pass; one tanh for g.
        sig = jax.nn.sigmoid(gates)
        i_g = sig[:, 0 * H:1 * H]
        f_g = sig[:, 1 * H:2 * H]
        o_g = sig[:, 3 * H:4 * H]
        g_g = jnp.tanh(gates[:, 2 * H:3 * H])
        c_new = f_g * c[l] + i_g * g_g
        h_new = o_g * jnp.tanh(c_new)
        c[l] = c_new
        h[l] = h_new
        if l + 1 < L:
            # Next layer's input projection, computed as soon as h_t exists.
            xp[l + 1][t] = jnp.dot(h_new, wih[l + 1],
                                   preferred_element_type=jnp.float32) + bias[l + 1]
        else:
            # Final-layer output sequence -> VMEM scratch (aligned 8-row store).
            hseq_ref[t * Bp:(t + 1) * Bp, :] = h_new

    # --- Wavefront over (layer, time): round r runs layer l at step r-l -----
    # The L cells active in a round are independent, so their MXU/EUP work
    # overlaps; total chain length ~ S + L - 1 rounds.
    for r in range(S + L - 1):
        for l in range(L):
            t = r - l
            if 0 <= t < S:
                cell(l, t)

    for l in range(L):
        hN_ref[l] = h[l]
        cN_ref[l] = c[l]

    # --- Fused ReLU + FC head: one matmul, one lane-dense store -------------
    y = jnp.maximum(hseq_ref[...], 0.0)                     # (S*Bp, H)
    out_ref[...] = jnp.dot(y, wfc_ref[...],
                           preferred_element_type=jnp.float32) + bfc_ref[...]


def fused_lstm_forward(x, lstm_params, h0, c0, w_fc_t, b_fc):
    """x: (B,S,I) f32; lstm_params: [(W_ih^T, W_hh^T, bias(1,4H))] per layer;
    h0,c0: (L,B,H); w_fc_t: (H,O); b_fc: (1,O).
    Returns out (B,S,O), hN (L,B,H), cN (L,B,H)."""
    B, S, I = x.shape
    L, _, H = h0.shape
    O = w_fc_t.shape[1]

    Bp = max(8, ((B + 7) // 8) * 8)          # sublane-aligned batch
    Op = ((O + 127) // 128) * 128            # lane-dense FC output

    # Time-major + pad batch, then flatten to (S*Bp, I).  One tiny XLA relayout.
    x_sbi = jnp.transpose(x, (1, 0, 2))
    x_sbi = jnp.pad(x_sbi, ((0, 0), (0, Bp - B), (0, 0)))
    x_flat = x_sbi.reshape(S * Bp, I)
    h0_p = jnp.pad(h0, ((0, 0), (0, Bp - B), (0, 0)))
    c0_p = jnp.pad(c0, ((0, 0), (0, Bp - B), (0, 0)))
    wfc = jnp.pad(w_fc_t, ((0, 0), (0, Op - O)))
    bfc = jnp.pad(b_fc, ((0, 0), (0, Op - O)))

    flat_params = []
    in_specs = [pl.BlockSpec((S * Bp, I), lambda i: (0, 0))]
    for (wih_t, whh_t, bias) in lstm_params:
        flat_params += [wih_t, whh_t, bias]
        in_specs += [
            pl.BlockSpec(wih_t.shape, lambda i: (0, 0)),
            pl.BlockSpec(whh_t.shape, lambda i: (0, 0)),
            pl.BlockSpec(bias.shape, lambda i: (0, 0)),
        ]
    in_specs += [
        pl.BlockSpec((L, Bp, H), lambda i: (0, 0, 0)),   # h0
        pl.BlockSpec((L, Bp, H), lambda i: (0, 0, 0)),   # c0
        pl.BlockSpec(wfc.shape, lambda i: (0, 0)),       # W_fc^T (padded)
        pl.BlockSpec(bfc.shape, lambda i: (0, 0)),       # b_fc   (padded)
    ]

    out_shape = (
        jax.ShapeDtypeStruct((S * Bp, Op), jnp.float32),
        jax.ShapeDtypeStruct((L, Bp, H), jnp.float32),
        jax.ShapeDtypeStruct((L, Bp, H), jnp.float32),
    )
    out_specs = [
        pl.BlockSpec((S * Bp, Op), lambda i: (0, 0)),
        pl.BlockSpec((L, Bp, H), lambda i: (0, 0, 0)),
        pl.BlockSpec((L, Bp, H), lambda i: (0, 0, 0)),
    ]

    grid_spec = pltpu.PrefetchScalarGridSpec(
        num_scalar_prefetch=0,
        grid=(1,),
        in_specs=in_specs,
        out_specs=out_specs,
        scratch_shapes=[pltpu.VMEM((S * Bp, H), jnp.float32)],
    )

    out_flat, hN, cN = pl.pallas_call(
        functools.partial(_fused_lstm_kernel, L, S, Bp, H),
        out_shape=out_shape,
        grid_spec=grid_spec,
        compiler_params=pltpu.CompilerParams(
            dimension_semantics=("arbitrary",)),
    )(x_flat, *flat_params, h0_p, c0_p, wfc, bfc)

    # Strip batch / lane padding and return batch-first output.
    out = out_flat.reshape(S, Bp, Op)[:, :B, :O]
    out = jnp.transpose(out, (1, 0, 2))
    return out, hN[:, :B, :], cN[:, :B, :]


# ---------------------------------------------------------------------------
# Module wrapper (mirrors the PyTorch LSTM module forward)
# ---------------------------------------------------------------------------
class LSTMPallas:
    def __init__(self, input_size, hidden_size, output_size, num_layers,
                 batch_size, key):
        self.input_size = input_size
        self.hidden_size = hidden_size
        self.output_size = output_size
        self.num_layers = num_layers
        self.batch_size = batch_size

        H = hidden_size
        scale = 1.0 / jnp.sqrt(jnp.float32(H))
        self.lstm_params = []
        for layer in range(num_layers):
            in_sz = input_size if layer == 0 else hidden_size
            key, k1, k2, k3, k4 = jax.random.split(key, 5)
            w_ih = jax.random.uniform(k1, (4 * H, in_sz), jnp.float32,
                                      -scale, scale)
            w_hh = jax.random.uniform(k2, (4 * H, H), jnp.float32,
                                      -scale, scale)
            b_ih = jax.random.uniform(k3, (4 * H,), jnp.float32, -scale, scale)
            b_hh = jax.random.uniform(k4, (4 * H,), jnp.float32, -scale, scale)
            self.lstm_params.append(
                (w_ih.T, w_hh.T, (b_ih + b_hh).reshape(1, 4 * H)))
        key, k5, k6 = jax.random.split(key, 3)
        fc_scale = 1.0 / jnp.sqrt(jnp.float32(H))
        w_fc = jax.random.uniform(k5, (output_size, H), jnp.float32,
                                  -fc_scale, fc_scale)
        b_fc = jax.random.uniform(k6, (output_size,), jnp.float32,
                                  -fc_scale, fc_scale)
        self.w_fc_t = w_fc.T
        self.b_fc = b_fc.reshape(1, output_size)

    def initial_hidden(self):
        z = jnp.zeros((self.num_layers, self.batch_size, self.hidden_size),
                      jnp.float32)
        return (z, z)

    def forward(self, x, hc):
        h0, c0 = hc
        x = x.astype(jnp.float32)
        out, h1, c1 = fused_lstm_forward(x, self.lstm_params, h0, c0,
                                         self.w_fc_t, self.b_fc)
        return out, (h1, c1)


# ---------------------------------------------------------------------------
# Pure-JAX reference for correctness checking
# ---------------------------------------------------------------------------
def reference_forward(model, x, hc):
    h0, c0 = hc
    x = x.astype(jnp.float32)
    B, S, _ = x.shape
    H = model.hidden_size
    xt = x
    hs, cs = [], []
    for layer in range(model.num_layers):
        wih_t, whh_t, b = model.lstm_params[layer]
        h = h0[layer]
        c = c0[layer]
        ys = []
        for t in range(S):
            g = xt[:, t, :] @ wih_t + h @ whh_t + b
            i = jax.nn.sigmoid(g[:, 0 * H:1 * H])
            f = jax.nn.sigmoid(g[:, 1 * H:2 * H])
            gg = jnp.tanh(g[:, 2 * H:3 * H])
            o = jax.nn.sigmoid(g[:, 3 * H:4 * H])
            c = f * c + i * gg
            h = o * jnp.tanh(c)
            ys.append(h)
        xt = jnp.stack(ys, axis=1)
        hs.append(h)
        cs.append(c)
    y = jnp.maximum(xt, 0.0)
    out = y @ model.w_fc_t + model.b_fc
    return out, (jnp.stack(hs), jnp.stack(cs))


if __name__ == "__main__":
    BATCH, SEQ, INPUT, HIDDEN, OUTPUT, LAYERS = 4, 8, 16, 32, 64, 2

    key = jax.random.PRNGKey(0)
    key, kp, kx = jax.random.split(key, 3)

    model = LSTMPallas(INPUT, HIDDEN, OUTPUT, LAYERS, BATCH, kp)

    x = jax.random.normal(kx, (BATCH, SEQ, INPUT), jnp.float32)
    hc = model.initial_hidden()

    out, (h1, c1) = model.forward(x, hc)
    jax.block_until_ready(out)
    jax.block_until_ready(h1)
    jax.block_until_ready(c1)

    ref_out, (ref_h1, ref_c1) = reference_forward(model, x, hc)
    assert jnp.allclose(out, ref_out, atol=1e-4, rtol=1e-4)
    assert jnp.allclose(h1, ref_h1, atol=1e-4, rtol=1e-4)
    assert jnp.allclose(c1, ref_c1, atol=1e-4, rtol=1e-4)

    print("KERNEL_OK")
</pallas_src>

<mosaic_0001>
module attributes {stable_mosaic.version = 11 : i64} {
  func.func @_fused_lstm_kernel(%arg0: i32, %arg1: memref<64x16xf32, #tpu.memory_space<vmem>>, %arg2: memref<16x128xf32, #tpu.memory_space<vmem>>, %arg3: memref<32x128xf32, #tpu.memory_space<vmem>>, %arg4: memref<1x128xf32, #tpu.memory_space<vmem>>, %arg5: memref<32x128xf32, #tpu.memory_space<vmem>>, %arg6: memref<32x128xf32, #tpu.memory_space<vmem>>, %arg7: memref<1x128xf32, #tpu.memory_space<vmem>>, %arg8: memref<2x8x32xf32, #tpu.memory_space<vmem>>, %arg9: memref<2x8x32xf32, #tpu.memory_space<vmem>>, %arg10: memref<32x128xf32, #tpu.memory_space<vmem>>, %arg11: memref<1x128xf32, #tpu.memory_space<vmem>>, %arg12: memref<64x128xf32, #tpu.memory_space<vmem>>, %arg13: memref<2x8x32xf32, #tpu.memory_space<vmem>>, %arg14: memref<2x8x32xf32, #tpu.memory_space<vmem>>, %arg15: memref<64x32xf32, #tpu.memory_space<vmem>>) attributes {dimension_semantics = [#tpu.dimension_semantics<arbitrary>], iteration_bounds = array<i64: 1>, scalar_prefetch = 0 : i64, scratch_operands = 1 : i64, tpu.core_type = #tpu.core_type<tc>, window_params = [{pipeline_mode = #tpu.pipeline_mode<synchronous>, transform_indices = @transform_0, window_bounds = array<i64: 64, 16>}, {pipeline_mode = #tpu.pipeline_mode<synchronous>, transform_indices = @transform_1, window_bounds = array<i64: 16, 128>}, {pipeline_mode = #tpu.pipeline_mode<synchronous>, transform_indices = @transform_2, window_bounds = array<i64: 32, 128>}, {pipeline_mode = #tpu.pipeline_mode<synchronous>, transform_indices = @transform_3, window_bounds = array<i64: 1, 128>}, {pipeline_mode = #tpu.pipeline_mode<synchronous>, transform_indices = @transform_4, window_bounds = array<i64: 32, 128>}, {pipeline_mode = #tpu.pipeline_mode<synchronous>, transform_indices = @transform_5, window_bounds = array<i64: 32, 128>}, {pipeline_mode = #tpu.pipeline_mode<synchronous>, transform_indices = @transform_6, window_bounds = array<i64: 1, 128>}, {pipeline_mode = #tpu.pipeline_mode<synchronous>, transform_indices = @transform_7, window_bounds = array<i64: 2, 8, 32>}, {pipeline_mode = #tpu.pipeline_mode<synchronous>, transform_indices = @transform_8, window_bounds = array<i64: 2, 8, 32>}, {pipeline_mode = #tpu.pipeline_mode<synchronous>, transform_indices = @transform_9, window_bounds = array<i64: 32, 128>}, {pipeline_mode = #tpu.pipeline_mode<synchronous>, transform_indices = @transform_10, window_bounds = array<i64: 1, 128>}, {pipeline_mode = #tpu.pipeline_mode<synchronous>, transform_indices = @transform_11, window_bounds = array<i64: 64, 128>}, {pipeline_mode = #tpu.pipeline_mode<synchronous>, transform_indices = @transform_12, window_bounds = array<i64: 2, 8, 32>}, {pipeline_mode = #tpu.pipeline_mode<synchronous>, transform_indices = @transform_13, window_bounds = array<i64: 2, 8, 32>}]} {
    %c0 = arith.constant 0 : index
    %c0_0 = arith.constant 0 : index
    %0 = vector.load %arg2[%c0, %c0_0] : memref<16x128xf32, #tpu.memory_space<vmem>>, vector<16x128xf32>
    %c0_1 = arith.constant 0 : index
    %c0_2 = arith.constant 0 : index
    %1 = vector.load %arg5[%c0_1, %c0_2] : memref<32x128xf32, #tpu.memory_space<vmem>>, vector<32x128xf32>
    %c0_3 = arith.constant 0 : index
    %c0_4 = arith.constant 0 : index
    %2 = vector.load %arg3[%c0_3, %c0_4] : memref<32x128xf32, #tpu.memory_space<vmem>>, vector<32x128xf32>
    %c0_5 = arith.constant 0 : index
    %c0_6 = arith.constant 0 : index
    %3 = vector.load %arg6[%c0_5, %c0_6] : memref<32x128xf32, #tpu.memory_space<vmem>>, vector<32x128xf32>
    %c0_7 = arith.constant 0 : index
    %c0_8 = arith.constant 0 : index
    %4 = vector.load %arg4[%c0_7, %c0_8] : memref<1x128xf32, #tpu.memory_space<vmem>>, vector<1x128xf32>
    %c0_9 = arith.constant 0 : index
    %c0_10 = arith.constant 0 : index
    %5 = vector.load %arg7[%c0_9, %c0_10] : memref<1x128xf32, #tpu.memory_space<vmem>>, vector<1x128xf32>
    %c0_11 = arith.constant 0 : index
    %c0_12 = arith.constant 0 : index
    %6 = vector.load %arg1[%c0_11, %c0_12] : memref<64x16xf32, #tpu.memory_space<vmem>>, vector<64x16xf32>
    %cst = arith.constant dense<0.000000e+00> : vector<64x128xf32>
    %7 = tpu.matmul %6, %0, %cst {dimension_numbers = #tpu.dot_dimension_numbers<[1], [0], [0], [1], [0, 0, 1, 1], [], []>} : vector<64x16xf32>, vector<16x128xf32>, vector<64x128xf32> -> vector<64x128xf32>
    %8 = vector.broadcast %4 : vector<1x128xf32> to vector<64x128xf32>
    %9 = arith.addf %7, %8 : vector<64x128xf32>
    %10 = vector.extract_strided_slice %9 {offsets = [0, 0], sizes = [8, 128], strides = [1, 1]} : vector<64x128xf32> to vector<8x128xf32>
    %11 = vector.extract_strided_slice %9 {offsets = [8, 0], sizes = [8, 128], strides = [1, 1]} : vector<64x128xf32> to vector<8x128xf32>
    %12 = vector.extract_strided_slice %9 {offsets = [16, 0], sizes = [8, 128], strides = [1, 1]} : vector<64x128xf32> to vector<8x128xf32>
    %13 = vector.extract_strided_slice %9 {offsets = [24, 0], sizes = [8, 128], strides = [1, 1]} : vector<64x128xf32> to vector<8x128xf32>
    %14 = vector.extract_strided_slice %9 {offsets = [32, 0], sizes = [8, 128], strides = [1, 1]} : vector<64x128xf32> to vector<8x128xf32>
    %15 = vector.extract_strided_slice %9 {offsets = [40, 0], sizes = [8, 128], strides = [1, 1]} : vector<64x128xf32> to vector<8x128xf32>
    %16 = vector.extract_strided_slice %9 {offsets = [48, 0], sizes = [8, 128], strides = [1, 1]} : vector<64x128xf32> to vector<8x128xf32>
    %17 = vector.extract_strided_slice %9 {offsets = [56, 0], sizes = [8, 128], strides = [1, 1]} : vector<64x128xf32> to vector<8x128xf32>
    %c0_13 = arith.constant 0 : index
    %c0_14 = arith.constant 0 : index
    %c0_15 = arith.constant 0 : index
    %18 = vector.load %arg8[%c0_13, %c0_14, %c0_15] : memref<2x8x32xf32, #tpu.memory_space<vmem>>, vector<1x8x32xf32>
    %19 = vector.shape_cast %18 : vector<1x8x32xf32> to vector<8x32xf32>
    %c1 = arith.constant 1 : index
    %c0_16 = arith.constant 0 : index
    %c0_17 = arith.constant 0 : index
    %20 = vector.load %arg8[%c1, %c0_16, %c0_17] : memref<2x8x32xf32, #tpu.memory_space<vmem>>, vector<1x8x32xf32>
    %21 = vector.shape_cast %20 : vector<1x8x32xf32> to vector<8x32xf32>
    %c0_18 = arith.constant 0 : index
    %c0_19 = arith.constant 0 : index
    %c0_20 = arith.constant 0 : index
    %22 = vector.load %arg9[%c0_18, %c0_19, %c0_20] : memref<2x8x32xf32, #tpu.memory_space<vmem>>, vector<1x8x32xf32>
    %23 = vector.shape_cast %22 : vector<1x8x32xf32> to vector<8x32xf32>
    %c1_21 = arith.constant 1 : index
    %c0_22 = arith.constant 0 : index
    %c0_23 = arith.constant 0 : index
    %24 = vector.load %arg9[%c1_21, %c0_22, %c0_23] : memref<2x8x32xf32, #tpu.memory_space<vmem>>, vector<1x8x32xf32>
    %25 = vector.shape_cast %24 : vector<1x8x32xf32> to vector<8x32xf32>
    %cst_24 = arith.constant dense<0.000000e+00> : vector<8x128xf32>
    %26 = tpu.matmul %19, %2, %cst_24 {dimension_numbers = #tpu.dot_dimension_numbers<[1], [0], [0], [1], [0, 0, 1, 1], [], []>} : vector<8x32xf32>, vector<32x128xf32>, vector<8x128xf32> -> vector<8x128xf32>
    %27 = arith.addf %10, %26 : vector<8x128xf32>
    %28 = arith.negf %27 : vector<8x128xf32>
    %29 = math.exp %28 : vector<8x128xf32>
    %cst_25 = arith.constant 1.000000e+00 : f32
    %30 = vector.broadcast %cst_25 : f32 to vector<8x128xf32>
    %31 = arith.addf %30, %29 : vector<8x128xf32>
    %32 = arith.divf %30, %31 : vector<8x128xf32>
    %33 = vector.extract_strided_slice %32 {offsets = [0, 0], sizes = [8, 32], strides = [1, 1]} : vector<8x128xf32> to vector<8x32xf32>
    %34 = vector.extract_strided_slice %32 {offsets = [0, 32], sizes = [8, 32], strides = [1, 1]} : vector<8x128xf32> to vector<8x32xf32>
    %35 = vector.extract_strided_slice %32 {offsets = [0, 96], sizes = [8, 32], strides = [1, 1]} : vector<8x128xf32> to vector<8x32xf32>
    %36 = vector.extract_strided_slice %27 {offsets = [0, 64], sizes = [8, 32], strides = [1, 1]} : vector<8x128xf32> to vector<8x32xf32>
    %37 = math.tanh %36 : vector<8x32xf32>
    %38 = arith.mulf %34, %23 : vector<8x32xf32>
    %39 = arith.mulf %33, %37 : vector<8x32xf32>
    %40 = arith.addf %38, %39 : vector<8x32xf32>
    %41 = math.tanh %40 : vector<8x32xf32>
    %42 = arith.mulf %35, %41 : vector<8x32xf32>
    %cst_26 = arith.constant dense<0.000000e+00> : vector<8x128xf32>
    %43 = tpu.matmul %42, %1, %cst_26 {dimension_numbers = #tpu.dot_dimension_numbers<[1], [0], [0], [1], [0, 0, 1, 1], [], []>} : vector<8x32xf32>, vector<32x128xf32>, vector<8x128xf32> -> vector<8x128xf32>
    %44 = vector.broadcast %5 : vector<1x128xf32> to vector<8x128xf32>
    %45 = arith.addf %43, %44 : vector<8x128xf32>
    %cst_27 = arith.constant dense<0.000000e+00> : vector<8x128xf32>
    %46 = tpu.matmul %42, %2, %cst_27 {dimension_numbers = #tpu.dot_dimension_numbers<[1], [0], [0], [1], [0, 0, 1, 1], [], []>} : vector<8x32xf32>, vector<32x128xf32>, vector<8x128xf32> -> vector<8x128xf32>
    %47 = arith.addf %11, %46 : vector<8x128xf32>
    %48 = arith.negf %47 : vector<8x128xf32>
    %49 = math.exp %48 : vector<8x128xf32>
    %cst_28 = arith.constant 1.000000e+00 : f32
    %50 = vector.broadcast %cst_28 : f32 to vector<8x128xf32>
    %51 = arith.addf %50, %49 : vector<8x128xf32>
    %52 = arith.divf %50, %51 : vector<8x128xf32>
    %53 = vector.extract_strided_slice %52 {offsets = [0, 0], sizes = [8, 32], strides = [1, 1]} : vector<8x128xf32> to vector<8x32xf32>
    %54 = vector.extract_strided_slice %52 {offsets = [0, 32], sizes = [8, 32], strides = [1, 1]} : vector<8x128xf32> to vector<8x32xf32>
    %55 = vector.extract_strided_slice %52 {offsets = [0, 96], sizes = [8, 32], strides = [1, 1]} : vector<8x128xf32> to vector<8x32xf32>
    %56 = vector.extract_strided_slice %47 {offsets = [0, 64], sizes = [8, 32], strides = [1, 1]} : vector<8x128xf32> to vector<8x32xf32>
    %57 = math.tanh %56 : vector<8x32xf32>
    %58 = arith.mulf %54, %40 : vector<8x32xf32>
    %59 = arith.mulf %53, %57 : vector<8x32xf32>
    %60 = arith.addf %58, %59 : vector<8x32xf32>
    %61 = math.tanh %60 : vector<8x32xf32>
    %62 = arith.mulf %55, %61 : vector<8x32xf32>
    %cst_29 = arith.constant dense<0.000000e+00> : vector<8x128xf32>
    %63 = tpu.matmul %62, %1, %cst_29 {dimension_numbers = #tpu.dot_dimension_numbers<[1], [0], [0], [1], [0, 0, 1, 1], [], []>} : vector<8x32xf32>, vector<32x128xf32>, vector<8x128xf32> -> vector<8x128xf32>
    %64 = vector.broadcast %5 : vector<1x128xf32> to vector<8x128xf32>
    %65 = arith.addf %63, %64 : vector<8x128xf32>
    %cst_30 = arith.constant dense<0.000000e+00> : vector<8x128xf32>
    %66 = tpu.matmul %21, %3, %cst_30 {dimension_numbers = #tpu.dot_dimension_numbers<[1], [0], [0], [1], [0, 0, 1, 1], [], []>} : vector<8x32xf32>, vector<32x128xf32>, vector<8x128xf32> -> vector<8x128xf32>
    %67 = arith.addf %45, %66 : vector<8x128xf32>
    %68 = arith.negf %67 : vector<8x128xf32>
    %69 = math.exp %68 : vector<8x128xf32>
    %cst_31 = arith.constant 1.000000e+00 : f32
    %70 = vector.broadcast %cst_31 : f32 to vector<8x128xf32>
    %71 = arith.addf %70, %69 : vector<8x128xf32>
    %72 = arith.divf %70, %71 : vector<8x128xf32>
    %73 = vector.extract_strided_slice %72 {offsets = [0, 0], sizes = [8, 32], strides = [1, 1]} : vector<8x128xf32> to vector<8x32xf32>
    %74 = vector.extract_strided_slice %72 {offsets = [0, 32], sizes = [8, 32], strides = [1, 1]} : vector<8x128xf32> to vector<8x32xf32>
    %75 = vector.extract_strided_slice %72 {offsets = [0, 96], sizes = [8, 32], strides = [1, 1]} : vector<8x128xf32> to vector<8x32xf32>
    %76 = vector.extract_strided_slice %67 {offsets = [0, 64], sizes = [8, 32], strides = [1, 1]} : vector<8x128xf32> to vector<8x32xf32>
    %77 = math.tanh %76 : vector<8x32xf32>
    %78 = arith.mulf %74, %25 : vector<8x32xf32>
    %79 = arith.mulf %73, %77 : vector<8x32xf32>
    %80 = arith.addf %78, %79 : vector<8x32xf32>
    %81 = math.tanh %80 : vector<8x32xf32>
    %82 = arith.mulf %75, %81 : vector<8x32xf32>
    %c0_32 = arith.constant 0 : index
    %c0_33 = arith.constant 0 : index
    %83 = vector.load %arg15[%c0_32, %c0_33] : memref<64x32xf32, #tpu.memory_space<vmem>>, vector<8x32xf32>
    tpu.vector_store %arg15[%c0_32, %c0_33], %82 {strides = array<i32>} : memref<64x32xf32, #tpu.memory_space<vmem>>, vector<8x32xf32>,
    %cst_34 = arith.constant dense<0.000000e+00> : vector<8x128xf32>
    %84 = tpu.matmul %62, %2, %cst_34 {dimension_numbers = #tpu.dot_dimension_numbers<[1], [0], [0], [1], [0, 0, 1, 1], [], []>} : vector<8x32xf32>, vector<32x128xf32>, vector<8x128xf32> -> vector<8x128xf32>
    %85 = arith.addf %12, %84 : vector<8x128xf32>
    %86 = arith.negf %85 : vector<8x128xf32>
    %87 = math.exp %86 : vector<8x128xf32>
    %cst_35 = arith.constant 1.000000e+00 : f32
    %88 = vector.broadcast %cst_35 : f32 to vector<8x128xf32>
    %89 = arith.addf %88, %87 : vector<8x128xf32>
    %90 = arith.divf %88, %89 : vector<8x128xf32>
    %91 = vector.extract_strided_slice %90 {offsets = [0, 0], sizes = [8, 32], strides = [1, 1]} : vector<8x128xf32> to vector<8x32xf32>
    %92 = vector.extract_strided_slice %90 {offsets = [0, 32], sizes = [8, 32], strides = [1, 1]} : vector<8x128xf32> to vector<8x32xf32>
    %93 = vector.extract_strided_slice %90 {offsets = [0, 96], sizes = [8, 32], strides = [1, 1]} : vector<8x128xf32> to vector<8x32xf32>
    %94 = vector.extract_strided_slice %85 {offsets = [0, 64], sizes = [8, 32], strides = [1, 1]} : vector<8x128xf32> to vector<8x32xf32>
    %95 = math.tanh %94 : vector<8x32xf32>
    %96 = arith.mulf %92, %60 : vector<8x32xf32>
    %97 = arith.mulf %91, %95 : vector<8x32xf32>
    %98 = arith.addf %96, %97 : vector<8x32xf32>
    %99 = math.tanh %98 : vector<8x32xf32>
    %100 = arith.mulf %93, %99 : vector<8x32xf32>
    %cst_36 = arith.constant dense<0.000000e+00> : vector<8x128xf32>
    %101 = tpu.matmul %100, %1, %cst_36 {dimension_numbers = #tpu.dot_dimension_numbers<[1], [0], [0], [1], [0, 0, 1, 1], [], []>} : vector<8x32xf32>, vector<32x128xf32>, vector<8x128xf32> -> vector<8x128xf32>
    %102 = vector.broadcast %5 : vector<1x128xf32> to vector<8x128xf32>
    %103 = arith.addf %101, %102 : vector<8x128xf32>
    %cst_37 = arith.constant dense<0.000000e+00> : vector<8x128xf32>
    %104 = tpu.matmul %82, %3, %cst_37 {dimension_numbers = #tpu.dot_dimension_numbers<[1], [0], [0], [1], [0, 0, 1, 1], [], []>} : vector<8x32xf32>, vector<32x128xf32>, vector<8x128xf32> -> vector<8x128xf32>
    %105 = arith.addf %65, %104 : vector<8x128xf32>
    %106 = arith.negf %105 : vector<8x128xf32>
    %107 = math.exp %106 : vector<8x128xf32>
    %cst_38 = arith.constant 1.000000e+00 : f32
    %108 = vector.broadcast %cst_38 : f32 to vector<8x128xf32>
    %109 = arith.addf %108, %107 : vector<8x128xf32>
    %110 = arith.divf %108, %109 : vector<8x128xf32>
    %111 = vector.extract_strided_slice %110 {offsets = [0, 0], sizes = [8, 32], strides = [1, 1]} : vector<8x128xf32> to vector<8x32xf32>
    %112 = vector.extract_strided_slice %110 {offsets = [0, 32], sizes = [8, 32], strides = [1, 1]} : vector<8x128xf32> to vector<8x32xf32>
    %113 = vector.extract_strided_slice %110 {offsets = [0, 96], sizes = [8, 32], strides = [1, 1]} : vector<8x128xf32> to vector<8x32xf32>
    %114 = vector.extract_strided_slice %105 {offsets = [0, 64], sizes = [8, 32], strides = [1, 1]} : vector<8x128xf32> to vector<8x32xf32>
    %115 = math.tanh %114 : vector<8x32xf32>
    %116 = arith.mulf %112, %80 : vector<8x32xf32>
    %117 = arith.mulf %111, %115 : vector<8x32xf32>
    %118 = arith.addf %116, %117 : vector<8x32xf32>
    %119 = math.tanh %118 : vector<8x32xf32>
    %120 = arith.mulf %113, %119 : vector<8x32xf32>
    %c8 = arith.constant 8 : index
    %c0_39 = arith.constant 0 : index
    %121 = vector.load %arg15[%c8, %c0_39] : memref<64x32xf32, #tpu.memory_space<vmem>>, vector<8x32xf32>
    tpu.vector_store %arg15[%c8, %c0_39], %120 {strides = array<i32>} : memref<64x32xf32, #tpu.memory_space<vmem>>, vector<8x32xf32>,
    %cst_40 = arith.constant dense<0.000000e+00> : vector<8x128xf32>
    %122 = tpu.matmul %100, %2, %cst_40 {dimension_numbers = #tpu.dot_dimension_numbers<[1], [0], [0], [1], [0, 0, 1, 1], [], []>} : vector<8x32xf32>, vector<32x128xf32>, vector<8x128xf32> -> vector<8x128xf32>
    %123 = arith.addf %13, %122 : vector<8x128xf32>
    %124 = arith.negf %123 : vector<8x128xf32>
    %125 = math.exp %124 : vector<8x128xf32>
    %cst_41 = arith.constant 1.000000e+00 : f32
    %126 = vector.broadcast %cst_41 : f32 to vector<8x128xf32>
    %127 = arith.addf %126, %125 : vector<8x128xf32>
    %128 = arith.divf %126, %127 : vector<8x128xf32>
    %129 = vector.extract_strided_slice %128 {offsets = [0, 0], sizes = [8, 32], strides = [1, 1]} : vector<8x128xf32> to vector<8x32xf32>
    %130 = vector.extract_strided_slice %128 {offsets = [0, 32], sizes = [8, 32], strides = [1, 1]} : vector<8x128xf32> to vector<8x32xf32>
    %131 = vector.extract_strided_slice %128 {offsets = [0, 96], sizes = [8, 32], strides = [1, 1]} : vector<8x128xf32> to vector<8x32xf32>
    %132 = vector.extract_strided_slice %123 {offsets = [0, 64], sizes = [8, 32], strides = [1, 1]} : vector<8x128xf32> to vector<8x32xf32>
    %133 = math.tanh %132 : vector<8x32xf32>
    %134 = arith.mulf %130, %98 : vector<8x32xf32>
    %135 = arith.mulf %129, %133 : vector<8x32xf32>
    %136 = arith.addf %134, %135 : vector<8x32xf32>
    %137 = math.tanh %136 : vector<8x32xf32>
    %138 = arith.mulf %131, %137 : vector<8x32xf32>
    %cst_42 = arith.constant dense<0.000000e+00> : vector<8x128xf32>
    %139 = tpu.matmul %138, %1, %cst_42 {dimension_numbers = #tpu.dot_dimension_numbers<[1], [0], [0], [1], [0, 0, 1, 1], [], []>} : vector<8x32xf32>, vector<32x128xf32>, vector<8x128xf32> -> vector<8x128xf32>
    %140 = vector.broadcast %5 : vector<1x128xf32> to vector<8x128xf32>
    %141 = arith.addf %139, %140 : vector<8x128xf32>
    %cst_43 = arith.constant dense<0.000000e+00> : vector<8x128xf32>
    %142 = tpu.matmul %120, %3, %cst_43 {dimension_numbers = #tpu.dot_dimension_numbers<[1], [0], [0], [1], [0, 0, 1, 1], [], []>} : vector<8x32xf32>, vector<32x128xf32>, vector<8x128xf32> -> vector<8x128xf32>
    %143 = arith.addf %103, %142 : vector<8x128xf32>
    %144 = arith.negf %143 : vector<8x128xf32>
    %145 = math.exp %144 : vector<8x128xf32>
    %cst_44 = arith.constant 1.000000e+00 : f32
    %146 = vector.broadcast %cst_44 : f32 to vector<8x128xf32>
    %147 = arith.addf %146, %145 : vector<8x128xf32>
    %148 = arith.divf %146, %147 : vector<8x128xf32>
    %149 = vector.extract_strided_slice %148 {offsets = [0, 0], sizes = [8, 32], strides = [1, 1]} : vector<8x128xf32> to vector<8x32xf32>
    %150 = vector.extract_strided_slice %148 {offsets = [0, 32], sizes = [8, 32], strides = [1, 1]} : vector<8x128xf32> to vector<8x32xf32>
    %151 = vector.extract_strided_slice %148 {offsets = [0, 96], sizes = [8, 32], strides = [1, 1]} : vector<8x128xf32> to vector<8x32xf32>
    %152 = vector.extract_strided_slice %143 {offsets = [0, 64], sizes = [8, 32], strides = [1, 1]} : vector<8x128xf32> to vector<8x32xf32>
    %153 = math.tanh %152 : vector<8x32xf32>
    %154 = arith.mulf %150, %118 : vector<8x32xf32>
    %155 = arith.mulf %149, %153 : vector<8x32xf32>
    %156 = arith.addf %154, %155 : vector<8x32xf32>
    %157 = math.tanh %156 : vector<8x32xf32>
    %158 = arith.mulf %151, %157 : vector<8x32xf32>
    %c16 = arith.constant 16 : index
    %c0_45 = arith.constant 0 : index
    %159 = vector.load %arg15[%c16, %c0_45] : memref<64x32xf32, #tpu.memory_space<vmem>>, vector<8x32xf32>
    tpu.vector_store %arg15[%c16, %c0_45], %158 {strides = array<i32>} : memref<64x32xf32, #tpu.memory_space<vmem>>, vector<8x32xf32>,
    %cst_46 = arith.constant dense<0.000000e+00> : vector<8x128xf32>
    %160 = tpu.matmul %138, %2, %cst_46 {dimension_numbers = #tpu.dot_dimension_numbers<[1], [0], [0], [1], [0, 0, 1, 1], [], []>} : vector<8x32xf32>, vector<32x128xf32>, vector<8x128xf32> -> vector<8x128xf32>
    %161 = arith.addf %14, %160 : vector<8x128xf32>
    %162 = arith.negf %161 : vector<8x128xf32>
    %163 = math.exp %162 : vector<8x128xf32>
    %cst_47 = arith.constant 1.000000e+00 : f32
    %164 = vector.broadcast %cst_47 : f32 to vector<8x128xf32>
    %165 = arith.addf %164, %163 : vector<8x128xf32>
    %166 = arith.divf %164, %165 : vector<8x128xf32>
    %167 = vector.extract_strided_slice %166 {offsets = [0, 0], sizes = [8, 32], strides = [1, 1]} : vector<8x128xf32> to vector<8x32xf32>
    %168 = vector.extract_strided_slice %166 {offsets = [0, 32], sizes = [8, 32], strides = [1, 1]} : vector<8x128xf32> to vector<8x32xf32>
    %169 = vector.extract_strided_slice %166 {offsets = [0, 96], sizes = [8, 32], strides = [1, 1]} : vector<8x128xf32> to vector<8x32xf32>
    %170 = vector.extract_strided_slice %161 {offsets = [0, 64], sizes = [8, 32], strides = [1, 1]} : vector<8x128xf32> to vector<8x32xf32>
    %171 = math.tanh %170 : vector<8x32xf32>
    %172 = arith.mulf %168, %136 : vector<8x32xf32>
    %173 = arith.mulf %167, %171 : vector<8x32xf32>
    %174 = arith.addf %172, %173 : vector<8x32xf32>
    %175 = math.tanh %174 : vector<8x32xf32>
    %176 = arith.mulf %169, %175 : vector<8x32xf32>
    %cst_48 = arith.constant dense<0.000000e+00> : vector<8x128xf32>
    %177 = tpu.matmul %176, %1, %cst_48 {dimension_numbers = #tpu.dot_dimension_numbers<[1], [0], [0], [1], [0, 0, 1, 1], [], []>} : vector<8x32xf32>, vector<32x128xf32>, vector<8x128xf32> -> vector<8x128xf32>
    %178 = vector.broadcast %5 : vector<1x128xf32> to vector<8x128xf32>
    %179 = arith.addf %177, %178 : vector<8x128xf32>
    %cst_49 = arith.constant dense<0.000000e+00> : vector<8x128xf32>
    %180 = tpu.matmul %158, %3, %cst_49 {dimension_numbers = #tpu.dot_dimension_numbers<[1], [0], [0], [1], [0, 0, 1, 1], [], []>} : vector<8x32xf32>, vector<32x128xf32>, vector<8x128xf32> -> vector<8x128xf32>
    %181 = arith.addf %141, %180 : vector<8x128xf32>
    %182 = arith.negf %181 : vector<8x128xf32>
    %183 = math.exp %182 : vector<8x128xf32>
    %cst_50 = arith.constant 1.000000e+00 : f32
    %184 = vector.broadcast %cst_50 : f32 to vector<8x128xf32>
    %185 = arith.addf %184, %183 : vector<8x128xf32>
    %186 = arith.divf %184, %185 : vector<8x128xf32>
    %187 = vector.extract_strided_slice %186 {offsets = [0, 0], sizes = [8, 32], strides = [1, 1]} : vector<8x128xf32> to vector<8x32xf32>
    %188 = vector.extract_strided_slice %186 {offsets = [0, 32], sizes = [8, 32], strides = [1, 1]} : vector<8x128xf32> to vector<8x32xf32>
    %189 = vector.extract_strided_slice %186 {offsets = [0, 96], sizes = [8, 32], strides = [1, 1]} : vector<8x128xf32> to vector<8x32xf32>
    %190 = vector.extract_strided_slice %181 {offsets = [0, 64], sizes = [8, 32], strides = [1, 1]} : vector<8x128xf32> to vector<8x32xf32>
    %191 = math.tanh %190 : vector<8x32xf32>
    %192 = arith.mulf %188, %156 : vector<8x32xf32>
    %193 = arith.mulf %187, %191 : vector<8x32xf32>
    %194 = arith.addf %192, %193 : vector<8x32xf32>
    %195 = math.tanh %194 : vector<8x32xf32>
    %196 = arith.mulf %189, %195 : vector<8x32xf32>
    %c24 = arith.constant 24 : index
    %c0_51 = arith.constant 0 : index
    %197 = vector.load %arg15[%c24, %c0_51] : memref<64x32xf32, #tpu.memory_space<vmem>>, vector<8x32xf32>
    tpu.vector_store %arg15[%c24, %c0_51], %196 {strides = array<i32>} : memref<64x32xf32, #tpu.memory_space<vmem>>, vector<8x32xf32>,
    %cst_52 = arith.constant dense<0.000000e+00> : vector<8x128xf32>
    %198 = tpu.matmul %176, %2, %cst_52 {dimension_numbers = #tpu.dot_dimension_numbers<[1], [0], [0], [1], [0, 0, 1, 1], [], []>} : vector<8x32xf32>, vector<32x128xf32>, vector<8x128xf32> -> vector<8x128xf32>
    %199 = arith.addf %15, %198 : vector<8x128xf32>
    %200 = arith.negf %199 : vector<8x128xf32>
    %201 = math.exp %200 : vector<8x128xf32>
    %cst_53 = arith.constant 1.000000e+00 : f32
    %202 = vector.broadcast %cst_53 : f32 to vector<8x128xf32>
    %203 = arith.addf %202, %201 : vector<8x128xf32>
    %204 = arith.divf %202, %203 : vector<8x128xf32>
    %205 = vector.extract_strided_slice %204 {offsets = [0, 0], sizes = [8, 32], strides = [1, 1]} : vector<8x128xf32> to vector<8x32xf32>
    %206 = vector.extract_strided_slice %204 {offsets = [0, 32], sizes = [8, 32], strides = [1, 1]} : vector<8x128xf32> to vector<8x32xf32>
    %207 = vector.extract_strided_slice %204 {offsets = [0, 96], sizes = [8, 32], strides = [1, 1]} : vector<8x128xf32> to vector<8x32xf32>
    %208 = vector.extract_strided_slice %199 {offsets = [0, 64], sizes = [8, 32], strides = [1, 1]} : vector<8x128xf32> to vector<8x32xf32>
    %209 = math.tanh %208 : vector<8x32xf32>
    %210 = arith.mulf %206, %174 : vector<8x32xf32>
    %211 = arith.mulf %205, %209 : vector<8x32xf32>
    %212 = arith.addf %210, %211 : vector<8x32xf32>
    %213 = math.tanh %212 : vector<8x32xf32>
    %214 = arith.mulf %207, %213 : vector<8x32xf32>
    %cst_54 = arith.constant dense<0.000000e+00> : vector<8x128xf32>
    %215 = tpu.matmul %214, %1, %cst_54 {dimension_numbers = #tpu.dot_dimension_numbers<[1], [0], [0], [1], [0, 0, 1, 1], [], []>} : vector<8x32xf32>, vector<32x128xf32>, vector<8x128xf32> -> vector<8x128xf32>
    %216 = vector.broadcast %5 : vector<1x128xf32> to vector<8x128xf32>
    %217 = arith.addf %215, %216 : vector<8x128xf32>
    %cst_55 = arith.constant dense<0.000000e+00> : vector<8x128xf32>
    %218 = tpu.matmul %196, %3, %cst_55 {dimension_numbers = #tpu.dot_dimension_numbers<[1], [0], [0], [1], [0, 0, 1, 1], [], []>} : vector<8x32xf32>, vector<32x128xf32>, vector<8x128xf32> -> vector<8x128xf32>
    %219 = arith.addf %179, %218 : vector<8x128xf32>
    %220 = arith.negf %219 : vector<8x128xf32>
    %221 = math.exp %220 : vector<8x128xf32>
    %cst_56 = arith.constant 1.000000e+00 : f32
    %222 = vector.broadcast %cst_56 : f32 to vector<8x128xf32>
    %223 = arith.addf %222, %221 : vector<8x128xf32>
    %224 = arith.divf %222, %223 : vector<8x128xf32>
    %225 = vector.extract_strided_slice %224 {offsets = [0, 0], sizes = [8, 32], strides = [1, 1]} : vector<8x128xf32> to vector<8x32xf32>
    %226 = vector.extract_strided_slice %224 {offsets = [0, 32], sizes = [8, 32], strides = [1, 1]} : vector<8x128xf32> to vector<8x32xf32>
    %227 = vector.extract_strided_slice %224 {offsets = [0, 96], sizes = [8, 32], strides = [1, 1]} : vector<8x128xf32> to vector<8x32xf32>
    %228 = vector.extract_strided_slice %219 {offsets = [0, 64], sizes = [8, 32], strides = [1, 1]} : vector<8x128xf32> to vector<8x32xf32>
    %229 = math.tanh %228 : vector<8x32xf32>
    %230 = arith.mulf %226, %194 : vector<8x32xf32>
    %231 = arith.mulf %225, %229 : vector<8x32xf32>
    %232 = arith.addf %230, %231 : vector<8x32xf32>
    %233 = math.tanh %232 : vector<8x32xf32>
    %234 = arith.mulf %227, %233 : vector<8x32xf32>
    %c32 = arith.constant 32 : index
    %c0_57 = arith.constant 0 : index
    %235 = vector.load %arg15[%c32, %c0_57] : memref<64x32xf32, #tpu.memory_space<vmem>>, vector<8x32xf32>
    tpu.vector_store %arg15[%c32, %c0_57], %234 {strides = array<i32>} : memref<64x32xf32, #tpu.memory_space<vmem>>, vector<8x32xf32>,
    %cst_58 = arith.constant dense<0.000000e+00> : vector<8x128xf32>
    %236 = tpu.matmul %214, %2, %cst_58 {dimension_numbers = #tpu.dot_dimension_numbers<[1], [0], [0], [1], [0, 0, 1, 1], [], []>} : vector<8x32xf32>, vector<32x128xf32>, vector<8x128xf32> -> vector<8x128xf32>
    %237 = arith.addf %16, %236 : vector<8x128xf32>
    %238 = arith.negf %237 : vector<8x128xf32>
    %239 = math.exp %238 : vector<8x128xf32>
    %cst_59 = arith.constant 1.000000e+00 : f32
    %240 = vector.broadcast %cst_59 : f32 to vector<8x128xf32>
    %241 = arith.addf %240, %239 : vector<8x128xf32>
    %242 = arith.divf %240, %241 : vector<8x128xf32>
    %243 = vector.extract_strided_slice %242 {offsets = [0, 0], sizes = [8, 32], strides = [1, 1]} : vector<8x128xf32> to vector<8x32xf32>
    %244 = vector.extract_strided_slice %242 {offsets = [0, 32], sizes = [8, 32], strides = [1, 1]} : vector<8x128xf32> to vector<8x32xf32>
    %245 = vector.extract_strided_slice %242 {offsets = [0, 96], sizes = [8, 32], strides = [1, 1]} : vector<8x128xf32> to vector<8x32xf32>
    %246 = vector.extract_strided_slice %237 {offsets = [0, 64], sizes = [8, 32], strides = [1, 1]} : vector<8x128xf32> to vector<8x32xf32>
    %247 = math.tanh %246 : vector<8x32xf32>
    %248 = arith.mulf %244, %212 : vector<8x32xf32>
    %249 = arith.mulf %243, %247 : vector<8x32xf32>
    %250 = arith.addf %248, %249 : vector<8x32xf32>
    %251 = math.tanh %250 : vector<8x32xf32>
    %252 = arith.mulf %245, %251 : vector<8x32xf32>
    %cst_60 = arith.constant dense<0.000000e+00> : vector<8x128xf32>
    %253 = tpu.matmul %252, %1, %cst_60 {dimension_numbers = #tpu.dot_dimension_numbers<[1], [0], [0], [1], [0, 0, 1, 1], [], []>} : vector<8x32xf32>, vector<32x128xf32>, vector<8x128xf32> -> vector<8x128xf32>
    %254 = vector.broadcast %5 : vector<1x128xf32> to vector<8x128xf32>
    %255 = arith.addf %253, %254 : vector<8x128xf32>
    %cst_61 = arith.constant dense<0.000000e+00> : vector<8x128xf32>
    %256 = tpu.matmul %234, %3, %cst_61 {dimension_numbers = #tpu.dot_dimension_numbers<[1], [0], [0], [1], [0, 0, 1, 1], [], []>} : vector<8x32xf32>, vector<32x128xf32>, vector<8x128xf32> -> vector<8x128xf32>
    %257 = arith.addf %217, %256 : vector<8x128xf32>
    %258 = arith.negf %257 : vector<8x128xf32>
    %259 = math.exp %258 : vector<8x128xf32>
    %cst_62 = arith.constant 1.000000e+00 : f32
    %260 = vector.broadcast %cst_62 : f32 to vector<8x128xf32>
    %261 = arith.addf %260, %259 : vector<8x128xf32>
    %262 = arith.divf %260, %261 : vector<8x128xf32>
    %263 = vector.extract_strided_slice %262 {offsets = [0, 0], sizes = [8, 32], strides = [1, 1]} : vector<8x128xf32> to vector<8x32xf32>
    %264 = vector.extract_strided_slice %262 {offsets = [0, 32], sizes = [8, 32], strides = [1, 1]} : vector<8x128xf32> to vector<8x32xf32>
    %265 = vector.extract_strided_slice %262 {offsets = [0, 96], sizes = [8, 32], strides = [1, 1]} : vector<8x128xf32> to vector<8x32xf32>
    %266 = vector.extract_strided_slice %257 {offsets = [0, 64], sizes = [8, 32], strides = [1, 1]} : vector<8x128xf32> to vector<8x32xf32>
    %267 = math.tanh %266 : vector<8x32xf32>
    %268 = arith.mulf %264, %232 : vector<8x32xf32>
    %269 = arith.mulf %263, %267 : vector<8x32xf32>
    %270 = arith.addf %268, %269 : vector<8x32xf32>
    %271 = math.tanh %270 : vector<8x32xf32>
    %272 = arith.mulf %265, %271 : vector<8x32xf32>
    %c40 = arith.constant 40 : index
    %c0_63 = arith.constant 0 : index
    %273 = vector.load %arg15[%c40, %c0_63] : memref<64x32xf32, #tpu.memory_space<vmem>>, vector<8x32xf32>
    tpu.vector_store %arg15[%c40, %c0_63], %272 {strides = array<i32>} : memref<64x32xf32, #tpu.memory_space<vmem>>, vector<8x32xf32>,
    %cst_64 = arith.constant dense<0.000000e+00> : vector<8x128xf32>
    %274 = tpu.matmul %252, %2, %cst_64 {dimension_numbers = #tpu.dot_dimension_numbers<[1], [0], [0], [1], [0, 0, 1, 1], [], []>} : vector<8x32xf32>, vector<32x128xf32>, vector<8x128xf32> -> vector<8x128xf32>
    %275 = arith.addf %17, %274 : vector<8x128xf32>
    %276 = arith.negf %275 : vector<8x128xf32>
    %277 = math.exp %276 : vector<8x128xf32>
    %cst_65 = arith.constant 1.000000e+00 : f32
    %278 = vector.broadcast %cst_65 : f32 to vector<8x128xf32>
    %279 = arith.addf %278, %277 : vector<8x128xf32>
    %280 = arith.divf %278, %279 : vector<8x128xf32>
    %281 = vector.extract_strided_slice %280 {offsets = [0, 0], sizes = [8, 32], strides = [1, 1]} : vector<8x128xf32> to vector<8x32xf32>
    %282 = vector.extract_strided_slice %280 {offsets = [0, 32], sizes = [8, 32], strides = [1, 1]} : vector<8x128xf32> to vector<8x32xf32>
    %283 = vector.extract_strided_slice %280 {offsets = [0, 96], sizes = [8, 32], strides = [1, 1]} : vector<8x128xf32> to vector<8x32xf32>
    %284 = vector.extract_strided_slice %275 {offsets = [0, 64], sizes = [8, 32], strides = [1, 1]} : vector<8x128xf32> to vector<8x32xf32>
    %285 = math.tanh %284 : vector<8x32xf32>
    %286 = arith.mulf %282, %250 : vector<8x32xf32>
    %287 = arith.mulf %281, %285 : vector<8x32xf32>
    %288 = arith.addf %286, %287 : vector<8x32xf32>
    %289 = math.tanh %288 : vector<8x32xf32>
    %290 = arith.mulf %283, %289 : vector<8x32xf32>
    %cst_66 = arith.constant dense<0.000000e+00> : vector<8x128xf32>
    %291 = tpu.matmul %290, %1, %cst_66 {dimension_numbers = #tpu.dot_dimension_numbers<[1], [0], [0], [1], [0, 0, 1, 1], [], []>} : vector<8x32xf32>, vector<32x128xf32>, vector<8x128xf32> -> vector<8x128xf32>
    %292 = vector.broadcast %5 : vector<1x128xf32> to vector<8x128xf32>
    %293 = arith.addf %291, %292 : vector<8x128xf32>
    %cst_67 = arith.constant dense<0.000000e+00> : vector<8x128xf32>
    %294 = tpu.matmul %272, %3, %cst_67 {dimension_numbers = #tpu.dot_dimension_numbers<[1], [0], [0], [1], [0, 0, 1, 1], [], []>} : vector<8x32xf32>, vector<32x128xf32>, vector<8x128xf32> -> vector<8x128xf32>
    %295 = arith.addf %255, %294 : vector<8x128xf32>
    %296 = arith.negf %295 : vector<8x128xf32>
    %297 = math.exp %296 : vector<8x128xf32>
    %cst_68 = arith.constant 1.000000e+00 : f32
    %298 = vector.broadcast %cst_68 : f32 to vector<8x128xf32>
    %299 = arith.addf %298, %297 : vector<8x128xf32>
    %300 = arith.divf %298, %299 : vector<8x128xf32>
    %301 = vector.extract_strided_slice %300 {offsets = [0, 0], sizes = [8, 32], strides = [1, 1]} : vector<8x128xf32> to vector<8x32xf32>
    %302 = vector.extract_strided_slice %300 {offsets = [0, 32], sizes = [8, 32], strides = [1, 1]} : vector<8x128xf32> to vector<8x32xf32>
    %303 = vector.extract_strided_slice %300 {offsets = [0, 96], sizes = [8, 32], strides = [1, 1]} : vector<8x128xf32> to vector<8x32xf32>
    %304 = vector.extract_strided_slice %295 {offsets = [0, 64], sizes = [8, 32], strides = [1, 1]} : vector<8x128xf32> to vector<8x32xf32>
    %305 = math.tanh %304 : vector<8x32xf32>
    %306 = arith.mulf %302, %270 : vector<8x32xf32>
    %307 = arith.mulf %301, %305 : vector<8x32xf32>
    %308 = arith.addf %306, %307 : vector<8x32xf32>
    %309 = math.tanh %308 : vector<8x32xf32>
    %310 = arith.mulf %303, %309 : vector<8x32xf32>
    %c48 = arith.constant 48 : index
    %c0_69 = arith.constant 0 : index
    %311 = vector.load %arg15[%c48, %c0_69] : memref<64x32xf32, #tpu.memory_space<vmem>>, vector<8x32xf32>
    tpu.vector_store %arg15[%c48, %c0_69], %310 {strides = array<i32>} : memref<64x32xf32, #tpu.memory_space<vmem>>, vector<8x32xf32>,
    %cst_70 = arith.constant dense<0.000000e+00> : vector<8x128xf32>
    %312 = tpu.matmul %310, %3, %cst_70 {dimension_numbers = #tpu.dot_dimension_numbers<[1], [0], [0], [1], [0, 0, 1, 1], [], []>} : vector<8x32xf32>, vector<32x128xf32>, vector<8x128xf32> -> vector<8x128xf32>
    %313 = arith.addf %293, %312 : vector<8x128xf32>
    %314 = arith.negf %313 : vector<8x128xf32>
    %315 = math.exp %314 : vector<8x128xf32>
    %cst_71 = arith.constant 1.000000e+00 : f32
    %316 = vector.broadcast %cst_71 : f32 to vector<8x128xf32>
    %317 = arith.addf %316, %315 : vector<8x128xf32>
    %318 = arith.divf %316, %317 : vector<8x128xf32>
    %319 = vector.extract_strided_slice %318 {offsets = [0, 0], sizes = [8, 32], strides = [1, 1]} : vector<8x128xf32> to vector<8x32xf32>
    %320 = vector.extract_strided_slice %318 {offsets = [0, 32], sizes = [8, 32], strides = [1, 1]} : vector<8x128xf32> to vector<8x32xf32>
    %321 = vector.extract_strided_slice %318 {offsets = [0, 96], sizes = [8, 32], strides = [1, 1]} : vector<8x128xf32> to vector<8x32xf32>
    %322 = vector.extract_strided_slice %313 {offsets = [0, 64], sizes = [8, 32], strides = [1, 1]} : vector<8x128xf32> to vector<8x32xf32>
    %323 = math.tanh %322 : vector<8x32xf32>
    %324 = arith.mulf %320, %308 : vector<8x32xf32>
    %325 = arith.mulf %319, %323 : vector<8x32xf32>
    %326 = arith.addf %324, %325 : vector<8x32xf32>
    %327 = math.tanh %326 : vector<8x32xf32>
    %328 = arith.mulf %321, %327 : vector<8x32xf32>
    %c56 = arith.constant 56 : index
    %c0_72 = arith.constant 0 : index
    %329 = vector.load %arg15[%c56, %c0_72] : memref<64x32xf32, #tpu.memory_space<vmem>>, vector<8x32xf32>
    tpu.vector_store %arg15[%c56, %c0_72], %328 {strides = array<i32>} : memref<64x32xf32, #tpu.memory_space<vmem>>, vector<8x32xf32>,
    %c0_73 = arith.constant 0 : index
    %c0_74 = arith.constant 0 : index
    %c0_75 = arith.constant 0 : index
    %330 = vector.load %arg13[%c0_73, %c0_74, %c0_75] : memref<2x8x32xf32, #tpu.memory_space<vmem>>, vector<1x8x32xf32>
    %331 = vector.shape_cast %330 : vector<1x8x32xf32> to vector<8x32xf32>
    %332 = vector.shape_cast %290 : vector<8x32xf32> to vector<1x8x32xf32>
    tpu.vector_store %arg13[%c0_73, %c0_74, %c0_75], %332 {strides = array<i32>} : memref<2x8x32xf32, #tpu.memory_space<vmem>>, vector<1x8x32xf32>,
    %c0_76 = arith.constant 0 : index
    %c0_77 = arith.constant 0 : index
    %c0_78 = arith.constant 0 : index
    %333 = vector.load %arg14[%c0_76, %c0_77, %c0_78] : memref<2x8x32xf32, #tpu.memory_space<vmem>>, vector<1x8x32xf32>
    %334 = vector.shape_cast %333 : vector<1x8x32xf32> to vector<8x32xf32>
    %335 = vector.shape_cast %288 : vector<8x32xf32> to vector<1x8x32xf32>
    tpu.vector_store %arg14[%c0_76, %c0_77, %c0_78], %335 {strides = array<i32>} : memref<2x8x32xf32, #tpu.memory_space<vmem>>, vector<1x8x32xf32>,
    %c1_79 = arith.constant 1 : index
    %c0_80 = arith.constant 0 : index
    %c0_81 = arith.constant 0 : index
    %336 = vector.load %arg13[%c1_79, %c0_80, %c0_81] : memref<2x8x32xf32, #tpu.memory_space<vmem>>, vector<1x8x32xf32>
    %337 = vector.shape_cast %336 : vector<1x8x32xf32> to vector<8x32xf32>
    %338 = vector.shape_cast %328 : vector<8x32xf32> to vector<1x8x32xf32>
    tpu.vector_store %arg13[%c1_79, %c0_80, %c0_81], %338 {strides = array<i32>} : memref<2x8x32xf32, #tpu.memory_space<vmem>>, vector<1x8x32xf32>,
    %c1_82 = arith.constant 1 : index
    %c0_83 = arith.constant 0 : index
    %c0_84 = arith.constant 0 : index
    %339 = vector.load %arg14[%c1_82, %c0_83, %c0_84] : memref<2x8x32xf32, #tpu.memory_space<vmem>>, vector<1x8x32xf32>
    %340 = vector.shape_cast %339 : vector<1x8x32xf32> to vector<8x32xf32>
    %341 = vector.shape_cast %326 : vector<8x32xf32> to vector<1x8x32xf32>
    tpu.vector_store %arg14[%c1_82, %c0_83, %c0_84], %341 {strides = array<i32>} : memref<2x8x32xf32, #tpu.memory_space<vmem>>, vector<1x8x32xf32>,
    %c0_85 = arith.constant 0 : index
    %c0_86 = arith.constant 0 : index
    %342 = vector.load %arg15[%c0_85, %c0_86] : memref<64x32xf32, #tpu.memory_space<vmem>>, vector<64x32xf32>
    %cst_87 = arith.constant 0.000000e+00 : f32
    %343 = vector.broadcast %cst_87 : f32 to vector<64x32xf32>
    %344 = arith.maximumf %342, %343 : vector<64x32xf32>
    %c0_88 = arith.constant 0 : index
    %c0_89 = arith.constant 0 : index
    %345 = vector.load %arg10[%c0_88, %c0_89] : memref<32x128xf32, #tpu.memory_space<vmem>>, vector<32x128xf32>
    %cst_90 = arith.constant dense<0.000000e+00> : vector<64x128xf32>
    %346 = tpu.matmul %344, %345, %cst_90 {dimension_numbers = #tpu.dot_dimension_numbers<[1], [0], [0], [1], [0, 0, 1, 1], [], []>} : vector<64x32xf32>, vector<32x128xf32>, vector<64x128xf32> -> vector<64x128xf32>
    %c0_91 = arith.constant 0 : index
    %c0_92 = arith.constant 0 : index
    %347 = vector.load %arg11[%c0_91, %c0_92] : memref<1x128xf32, #tpu.memory_space<vmem>>, vector<1x128xf32>
    %348 = vector.broadcast %347 : vector<1x128xf32> to vector<64x128xf32>
    %349 = arith.addf %346, %348 : vector<64x128xf32>
    %c0_93 = arith.constant 0 : index
    %c0_94 = arith.constant 0 : index
    %350 = vector.load %arg12[%c0_93, %c0_94] : memref<64x128xf32, #tpu.memory_space<vmem>>, vector<64x128xf32>
    tpu.vector_store %arg12[%c0_93, %c0_94], %349 {strides = array<i32>} : memref<64x128xf32, #tpu.memory_space<vmem>>, vector<64x128xf32>,
    return
  }
  func.func @transform_0(%arg0: i32) -> (i32, i32) {
    %c0_i32 = arith.constant 0 : i32
    %c0_i32_0 = arith.constant 0 : i32
    %c0_i32_1 = arith.constant 0 : i32
    return %c0_i32, %c0_i32_0 : i32, i32
  }
  func.func @transform_1(%arg0: i32) -> (i32, i32) {
    %c0_i32 = arith.constant 0 : i32
    %c0_i32_0 = arith.constant 0 : i32
    %c0_i32_1 = arith.constant 0 : i32
    return %c0_i32, %c0_i32_0 : i32, i32
  }
  func.func @transform_2(%arg0: i32) -> (i32, i32) {
    %c0_i32 = arith.constant 0 : i32
    %c0_i32_0 = arith.constant 0 : i32
    %c0_i32_1 = arith.constant 0 : i32
    return %c0_i32, %c0_i32_0 : i32, i32
  }
  func.func @transform_3(%arg0: i32) -> (i32, i32) {
    %c0_i32 = arith.constant 0 : i32
    %c0_i32_0 = arith.constant 0 : i32
    %c0_i32_1 = arith.constant 0 : i32
    return %c0_i32, %c0_i32_0 : i32, i32
  }
  func.func @transform_4(%arg0: i32) -> (i32, i32) {
    %c0_i32 = arith.constant 0 : i32
    %c0_i32_0 = arith.constant 0 : i32
    %c0_i32_1 = arith.constant 0 : i32
    return %c0_i32, %c0_i32_0 : i32, i32
  }
  func.func @transform_5(%arg0: i32) -> (i32, i32) {
    %c0_i32 = arith.constant 0 : i32
    %c0_i32_0 = arith.constant 0 : i32
    %c0_i32_1 = arith.constant 0 : i32
    return %c0_i32, %c0_i32_0 : i32, i32
  }
  func.func @transform_6(%arg0: i32) -> (i32, i32) {
    %c0_i32 = arith.constant 0 : i32
    %c0_i32_0 = arith.constant 0 : i32
    %c0_i32_1 = arith.constant 0 : i32
    return %c0_i32, %c0_i32_0 : i32, i32
  }
  func.func @transform_7(%arg0: i32) -> (i32, i32, i32) {
    %c0_i32 = arith.constant 0 : i32
    %c0_i32_0 = arith.constant 0 : i32
    %c0_i32_1 = arith.constant 0 : i32
    %c0_i32_2 = arith.constant 0 : i32
    return %c0_i32, %c0_i32_0, %c0_i32_1 : i32, i32, i32
  }
  func.func @transform_8(%arg0: i32) -> (i32, i32, i32) {
    %c0_i32 = arith.constant 0 : i32
    %c0_i32_0 = arith.constant 0 : i32
    %c0_i32_1 = arith.constant 0 : i32
    %c0_i32_2 = arith.constant 0 : i32
    return %c0_i32, %c0_i32_0, %c0_i32_1 : i32, i32, i32
  }
  func.func @transform_9(%arg0: i32) -> (i32, i32) {
    %c0_i32 = arith.constant 0 : i32
    %c0_i32_0 = arith.constant 0 : i32
    %c0_i32_1 = arith.constant 0 : i32
    return %c0_i32, %c0_i32_0 : i32, i32
  }
  func.func @transform_10(%arg0: i32) -> (i32, i32) {
    %c0_i32 = arith.constant 0 : i32
    %c0_i32_0 = arith.constant 0 : i32
    %c0_i32_1 = arith.constant 0 : i32
    return %c0_i32, %c0_i32_0 : i32, i32
  }
  func.func @transform_11(%arg0: i32) -> (i32, i32) {
    %c0_i32 = arith.constant 0 : i32
    %c0_i32_0 = arith.constant 0 : i32
    %c0_i32_1 = arith.constant 0 : i32
    return %c0_i32, %c0_i32_0 : i32, i32
  }
  func.func @transform_12(%arg0: i32) -> (i32, i32, i32) {
    %c0_i32 = arith.constant 0 : i32
    %c0_i32_0 = arith.constant 0 : i32
    %c0_i32_1 = arith.constant 0 : i32
    %c0_i32_2 = arith.constant 0 : i32
    return %c0_i32, %c0_i32_0, %c0_i32_1 : i32, i32, i32
  }
  func.func @transform_13(%arg0: i32) -> (i32, i32, i32) {
    %c0_i32 = arith.constant 0 : i32
    %c0_i32_0 = arith.constant 0 : i32
    %c0_i32_1 = arith.constant 0 : i32
    %c0_i32_2 = arith.constant 0 : i32
    return %c0_i32, %c0_i32_0, %c0_i32_1 : i32, i32, i32
  }
}

</mosaic_0001>

<bundles_post_ra>
// kernel: tpu_custom_call.1
= control target key start
LH: loop header
LB: loop body
LE: loop exit
PB: predicated region body
PF: predicated region fallthrough
CT: control target
= control target key end

     0   :  { %19 = vsyncpa [#allocation4], 0  ;;  %s4277_s0 = inlined_call_operand.vmem [shape: f32[64,16], index: 0, kind: input, shape index: {}]   ;;  %s4278_s1 = inlined_call_operand.hbm [shape: f32[16,128], index: 1, kind: input, shape index: {}]   ;;  %s4279_s2 = inlined_call_operand.vmem [shape: f32[32,128], index: 2, kind: input, shape index: {}]   ;;  %s4280_s3 = inlined_call_operand.hbm [shape: f32[1,128], index: 3, kind: input, shape index: {}]   ;;  %s4281_s4 = inlined_call_operand.vmem [shape: f32[32,128], index: 4, kind: input, shape index: {}]   ;;  %s4282_s5 = inlined_call_operand.hbm [shape: f32[32,128], index: 5, kind: input, shape index: {}]   ;;  %s4283_s6 = inlined_call_operand.hbm [shape: f32[1,128], index: 6, kind: input, shape index: {}]   ;;  %s4284_s7 = inlined_call_operand.hbm [shape: f32[2,8,32], index: 7, kind: input, shape index: {}]   ;;  %s4285_s8 = inlined_call_operand.hbm [shape: f32[2,8,32], index: 8, kind: input, shape index: {}]   ;;  %s4286_s9 = inlined_call_operand.vmem [shape: f32[32,128], index: 9, kind: input, shape index: {}]   ;;  %s4287_s10 = inlined_call_operand.vmem [shape: f32[1,128], index: 10, kind: input, shape index: {}]   ;;  %s4288_s11 = inlined_call_operand.hbm [shape: f32[64,128], index: 11, kind: output, shape index: {0}]   ;;  %s4289_s12 = inlined_call_operand.hbm [shape: f32[2,8,32], index: 12, kind: output, shape index: {1}]   ;;  %s4290_s13 = inlined_call_operand.hbm [shape: f32[2,8,32], index: 13, kind: output, shape index: {2}]  }
   0x1   :  { %20 = vsyncpa [#allocation7], 0 }
   0x2   :  { %21 = vsyncpa [#allocation10], 0 }
   0x3   :  { %22 = vsyncpa [#allocation13], 0 }
   0x4   :  { %23 = vsyncpa [#allocation5], 0 }
   0x5   :  { %24 = vsyncpa [#allocation16], 0  ;;  %s3563_s25 = smov [#allocation6]   ;;  %s3564_s27 = smov [#allocation9]  }
   0x6   :  { %s47_s26 = sshll.u32 %s3563_s25, 4  ;;  %s71_s28 = sshll.u32 %s3564_s27, 4  ;;  %s48_s26 = int_to_ptr.vmem [resolvable:$true] %s47_s26  ;;  %s72_s28 = int_to_ptr.vmem [resolvable:$true] %s71_s28 }
   0x7   :  { %s3379_s29 = scalar_lea.vmem %s48_s26, 16  ;;  %s3383_s30 = scalar_lea.vmem %s48_s26, 32 }
   0x8   :  { %p3380_p0 = scmp.ne.s32.totalorder %s48_s26, %s3379_s29  ;;  %p3384_p1 = scmp.lt.s32.totalorder %s48_s26, %s48_s26 }
   0x9   :  { %p3385_p2 = scmp.lt.s32.totalorder %s3383_s30, %s3379_s29 }
   0xb   :  { %p3386_p3 = por %p3385_p2, %p3384_p1 }
   0xd   :  { %p3387_p4 = pnand %p3386_p3, %p3380_p0 }
   0xf   :  { %3390 = shalt.err (!%p3387_p4)
}
  0x10   :  { %50 = dma.hbm_to_vmem [thread:$0]  %s4280_s3, 16, %s48_s26, [#allocation7]  }
  0x11   :  { %s3399_s16 = scalar_lea.vmem %s72_s28, 16  ;;  %s3403_s17 = scalar_lea.vmem %s72_s28, 32 }
  0x12   :  { %p3400_p5 = scmp.ne.s32.totalorder %s72_s28, %s3399_s16  ;;  %p3404_p6 = scmp.lt.s32.totalorder %s72_s28, %s72_s28 }
  0x13   :  { %p3405_p7 = scmp.lt.s32.totalorder %s3403_s17, %s3399_s16 }
  0x15   :  { %p3406_p8 = por %p3405_p7, %p3404_p6 }
  0x17   :  { %p3407_p9 = pnand %p3406_p8, %p3400_p5 }
  0x19   :  { %3410 = shalt.err (!%p3407_p9)
}
  0x1a   :  { %74 = dma.hbm_to_vmem [thread:$0]  %s4283_s6, 16, %s72_s28, [#allocation10]  }
  0x1b   :  { %s3565_s20 = smov [#allocation3]  }
  0x1c   :  { %s32_s21 = sshll.u32 %s3565_s20, 4  ;;  %s33_s21 = int_to_ptr.vmem [resolvable:$true] %s32_s21 }
  0x1d   :  { %s3419_s22 = scalar_lea.vmem %s33_s21, 256  ;;  %p3424_p11 = scmp.lt.s32.totalorder %s33_s21, %s33_s21 }
  0x1e   :  { %p3420_p10 = scmp.ne.s32.totalorder %s33_s21, %s3419_s22  ;;  %p3425_p12 = scmp.lt.s32.totalorder %s3419_s22, %s3419_s22 }
  0x20   :  { %p3426_p13 = por %p3425_p12, %p3424_p11 }
  0x22   :  { %p3427_p0 = pnand %p3426_p13, %p3420_p10 }
  0x24   :  { %3430 = shalt.err (!%p3427_p0)
}
  0x25   :  { %s3566_s3 = smov 128   ;;  %s3567_s23 = smov 8  }
  0x26   :  { %38 = dma.hbm_to_vmem [thread:$0]  %s4278_s1, 256, %s33_s21, [#allocation4], %s3566_s3, %s3566_s3, %s3567_s23  }
  0x27   :  { %s3568_s6 = smov [#allocation8]   ;;  %s3569_s27 = smov [#allocation11]  }
  0x28   :  { %s58_s26 = sshll.u32 %s3568_s6, 4  ;;  %s80_s28 = sshll.u32 %s3569_s27, 4  ;;  %s59_s26 = int_to_ptr.vmem [resolvable:$true] %s58_s26  ;;  %s81_s28 = int_to_ptr.vmem [resolvable:$true] %s80_s28 }
  0x29   :  { %s3439_s29 = scalar_lea.vmem %s59_s26, 512  ;;  %p3444_p2 = scmp.lt.s32.totalorder %s59_s26, %s59_s26 }
  0x2a   :  { %p3440_p1 = scmp.ne.s32.totalorder %s59_s26, %s3439_s29  ;;  %p3445_p3 = scmp.lt.s32.totalorder %s3439_s29, %s3439_s29 }
  0x2c   :  { %p3446_p4 = por %p3445_p3, %p3444_p2 }
  0x2e   :  { %p3447_p5 = pnand %p3446_p4, %p3440_p1 }
  0x30   :  { %3450 = shalt.err (!%p3447_p5)
}
  0x31   :  { %64 = dma.hbm_to_vmem [thread:$0]  %s4282_s5, 512, %s59_s26, [#allocation7], %s3566_s3, %s3566_s3, %s3567_s23  }
  0x32   :  { %s3459_s1 = scalar_lea.vmem %s81_s28, 256  ;;  %p3464_p7 = scmp.lt.s32.totalorder %s81_s28, %s81_s28 }
  0x33   :  { %p3460_p6 = scmp.ne.s32.totalorder %s81_s28, %s3459_s1  ;;  %p3465_p8 = scmp.lt.s32.totalorder %s3459_s1, %s3459_s1 }
  0x35   :  { %p3466_p9 = por %p3465_p8, %p3464_p7 }
  0x37   :  { %p3467_p10 = pnand %p3466_p9, %p3460_p6 }
  0x39   :  { %3470 = shalt.err (!%p3467_p10)
}
  0x3a   :  { %86 = dma.hbm_to_vmem [thread:$0]  %s4284_s7, 256, %s81_s28, [#allocation10], %s3566_s3, %s3566_s3, %s3567_s23  }
  0x3b   :  { %s3570_s17 = smov [#allocation12]  }
  0x3c   :  { %s92_s18 = sshll.u32 %s3570_s17, 4  ;;  %s93_s18 = int_to_ptr.vmem [resolvable:$true] %s92_s18 }
  0x3d   :  { %s3479_s19 = scalar_lea.vmem %s93_s18, 256  ;;  %p3484_p12 = scmp.lt.s32.totalorder %s93_s18, %s93_s18 }
  0x3e   :  { %p3480_p11 = scmp.ne.s32.totalorder %s93_s18, %s3479_s19  ;;  %p3485_p13 = scmp.lt.s32.totalorder %s3479_s19, %s3479_s19 }
  0x40   :  { %p3486_p0 = por %p3485_p13, %p3484_p12 }
  0x42   :  { %p3487_p1 = pnand %p3486_p0, %p3480_p11 }
  0x44   :  { %3490 = shalt.err (!%p3487_p1)
}
  0x45   :  { %98 = dma.hbm_to_vmem [thread:$0]  %s4285_s8, 256, %s93_s18, [#allocation13], %s3566_s3, %s3566_s3, %s3567_s23  }
  0x46   :  { %3551 = dma.done.wait [#allocation4], 256  }
  0x47   :  { %3552 = vsyncadd [#allocation4], 4294967040 }
  0x48   :  { %3553 = dma.done.wait [#allocation7], 528  }
  0x49   :  { %3554 = vsyncadd [#allocation7], 4294966768 }
  0x4a   :  { %3555 = dma.done.wait [#allocation10], 272  }
  0x4b   :  { %3556 = vsyncadd [#allocation10], 4294967024 }
  0x4c   :  { %3557 = dma.done.wait [#allocation13], 256  }
  0x4d   :  { %3558 = vsyncadd [#allocation13], 4294967040  ;;  %vm151_vm0 = vcmask 130048   ;;  %v122_v0 = vld [vmem:[#allocation3 + $0x8] sm:$0xff]  ;;  %v121_v1 = vld [vmem:[#allocation3] sm:$0xff]  ;;  %v3571_v6 = vmov 0.0  }
  0x4e   :  { %v141_v2 = vld [vmem:[%s4277_s0 + $0x20] sm:$0xff]  ;;  %3213 = vmatprep.subr.mxu1 %v122_v0  ;;  %2913 = vmatprep.subr.mxu0 %v122_v0  ;;  %v142_v3 = vld [vmem:[%s4277_s0 + $0x28] sm:$0xff]  ;;  %v3689_v4 = vld [vmem:[%s4279_s2 + $0x18] sm:$0xff]  ;;  %vm3572_vm1 = vmmov 0   ;;  %vm287_vm2 = vcmask 261120   ;;  %s3573_s20 = smov 64  }
  0x4f   :  { %3215 = vmatpush3.msra.mxu1 %v122_v0  ;;  %2923 = vmatprep.mubr.msk.f32.mxu1 %vm151_vm0, %v141_v2  ;;  %v137_v5 = vld [vmem:[%s4277_s0] sm:$0xff]  ;;  %v138_v7 = vld [vmem:[%s4277_s0 + $0x8] sm:$0xff]  ;;  %v143_v8 = vld [vmem:[%s4277_s0 + $0x30] sm:$0xff]  ;;  %s3574_s7 = smov 32  }
  0x50   :  { %3214 = vmatprep.subr.mxu1 %v121_v1  ;;  %2914 = vmatpush3.msra.mxu0 %v122_v0  ;;  %v3706_v9 = vld [vmem:[%s4279_s2 + $0x10] sm:$0xff]  ;;  %v144_v10 = vld [vmem:[%s4277_s0 + $0x38] sm:$0xff]  ;;  %v3718_v11 = vld [vmem:[%s4279_s2 + $0x8] sm:$0xff] }
  0x51   :  { %3216 = vmatpush3.msra.mxu1 %v121_v1  ;;  %2915 = vmatprep.subr.mxu0 %v121_v1  ;;  %v3727_v12 = vld [vmem:[%s4279_s2] sm:$0xff]  ;;  %v281_v13 = vld [vmem:[#allocation11] sm:$0xff]  ;;  %v3754_v19 = vld [vmem:[#allocation6] ss:$0 sm:$0xff] }
  0x52   :  { %2924 = vmatmul.mubr.msk.f32.vlgmr.msra.gmra.mxu1 %vm151_vm0, %v142_v3  ;;  %2929 = vmatprep.subr.mxu1 %v3571_v6  ;;  %v284_v26 = vld [vmem:[#allocation12] sm:$0xff]  ;;  %v3768_v37 = vld [vmem:[%s4281_s4 + $0x18] sm:$0xff]  ;;  %v139_v38 = vld [vmem:[%s4277_s0 + $0x10] sm:$0xff] }
  0x53   :  { %2930 = vmatpush3.msra.mxu1 %v3689_v4  ;;  %2916 = vmatpush3.msra.mxu0 %v121_v1  ;;  %v140_v39 = vld [vmem:[%s4277_s0 + $0x18] sm:$0xff]  ;;  %v3781_v40 = vld [vmem:[%s4281_s4 + $0x10] sm:$0xff]  ;;  %v3788_v41 = vld [vmem:[%s4281_s4 + $0x8] sm:$0xff] }
  0x54   :  { %2917 = vmatprep.mubr.msk.f32.mxu0 %vm151_vm0, %v137_v5  ;;  %2931 = vmatprep.subr.mxu1 %v3571_v6  ;;  %v3797_v42 = vld [vmem:[%s4281_s4] sm:$0xff]  ;;  %v3805_v46 = vld [vmem:[#allocation8 + $0x18] sm:$0xff]  ;;  %v3821_v50 = vld [vmem:[#allocation8] sm:$0xff] }
  0x55   :  { %2918 = vmatmul.mubr.msk.f32.vlgmr.msra.gmra.mxu0 %vm151_vm0, %v138_v7  ;;  %2926 = vmatprep.mubr.msk.f32.mxu1 %vm151_vm0, %v143_v8  ;;  %v3809_v48 = vld [vmem:[#allocation8 + $0x10] sm:$0xff]  ;;  %v3815_v49 = vld [vmem:[#allocation8 + $0x8] sm:$0xff]  ;;  %v3852_v60 = vld [vmem:[#allocation9] ss:$0 sm:$0xff] }
  0x56   :  { %2932 = vmatpush3.msra.mxu1 %v3706_v9  ;;  %2951 = vmatprep.subr.mxu0 %v3571_v6  ;;  %v283_v51 = vld [vmem:[#allocation11 + $0x8] sm:$0xff]  ;;  %v286_v3 = vld [vmem:[#allocation12 + $0x8] sm:$0xff] }
  0x57   :  { %2927 = vmatmul.mubr.msk.f32.gmra.mxu1 %vm151_vm0, %v144_v10  ;;  %2933 = vmatprep.subr.mxu1 %v3571_v6 }
  0x58   :  { %2934 = vmatpush3.msra.mxu1 %v3718_v11  ;;  %2937 = vmatprep.mubr.msk.f32.mxu1 %vm3572_vm1, %v3571_v6 }
  0x59   :  { %2935 = vmatprep.subr.mxu1 %v3571_v6  ;;  %2952 = vmatpush3.msra.mxu0 %v3689_v4 }
  0x5a   :  { %2936 = vmatpush3.msra.mxu1 %v3727_v12  ;;  %2953 = vmatprep.subr.mxu0 %v3571_v6 }
  0x5b   :  { %2938 = vmatmul.mubr.msk.f32.vlgmr.msra.gmra.mxu1 %vm287_vm2, %v281_v13  ;;  %2940 = vmatprep.subr.mxu1 %v3571_v6 }
  0x5c   :  { %2954 = vmatpush3.msra.mxu0 %v3706_v9  ;;  %2948 = vmatprep.mubr.msk.f32.mxu1 %vm3572_vm1, %v3571_v6 }
  0x5d   :  { %2955 = vmatprep.subr.mxu0 %v3571_v6  ;;  %2941 = vmatpush3.msra.mxu1 %v3768_v37 }
  0x5e   :  { %2956 = vmatpush3.msra.mxu0 %v3718_v11  ;;  %2920 = vmatprep.mubr.msk.f32.mxu0 %vm151_vm0, %v139_v38 }
  0x5f   :  { %2957 = vmatprep.subr.mxu0 %v3571_v6  ;;  %2942 = vmatprep.subr.mxu1 %v3571_v6 }
  0x60   :  { %2958 = vmatpush3.msra.mxu0 %v3727_v12  ;;  %2943 = vmatpush3.msra.mxu1 %v3781_v40 }
  0x61   :  { %2973 = vmatprep.subr.mxu0 %v3571_v6  ;;  %2921 = vmatmul.mubr.msk.f32.gmra.mxu0 %vm151_vm0, %v140_v39 }
  0x62   :  { %2959 = vmatprep.mubr.msk.f32.mxu0 %vm3572_vm1, %v3571_v6  ;;  %2944 = vmatprep.subr.mxu1 %v3571_v6 }
  0x63   :  { %2945 = vmatpush3.msra.mxu1 %v3788_v41 }
  0x64   :  { %2946 = vmatprep.subr.mxu1 %v3571_v6 }
  0x65   :  { %2947 = vmatpush3.msra.mxu1 %v3797_v42 }
  0x66   :  { %2962 = vmatprep.subr.mxu1 %v3571_v6 }
 0x112   :  { %v3746_v14 = vpop.f32.mrf.mxu1 }
 0x114   :  { %v3748_v15 = vpop.f32.mrf.mxu1 }
 0x115   :  { %v3750_v16 = vpop.f32.mrf.mxu0 }
 0x116   :  { %v248_v54 = vadd.f32 %v3750_v16, %v3754_v19 }
 0x117   :  { %v3752_v17 = vpop.f32.mrf.mxu1  ;;  %v242_v18 = vpop.f32.mrf.mxu0 }
 0x118   :  { %v243_v21 = vadd.f32 %v3754_v19, %v242_v18 }
 0x119   :  { %v3756_v20 = vpop.f32.mrf.mxu1 }
 0x11b   :  { %v357_v22 = vpop.f32.mrf.mxu1 }
 0x11c   :  { %v361_v23 = vadd.f32 %v357_v22, %v243_v21 }
 0x11d   :  { %v2939_v24 = vpop.f32.mrf.mxu1 }
 0x11e   :  { %3233 = vtanh.f32 %v361_v23  ;;  %v2722_v27 = vmul.f32 -1.442695, %v361_v23 }
 0x120   :  { %3235 = vpow2.f32 %v2722_v27 }
 0x121   :  { %v3846_v52 = vpop.f32.mrf.mxu0 }
 0x123   :  { %v3848_v53 = vpop.f32.mrf.mxu0 }
 0x12b   :  { %v3234_v25 = vpop.eup %3233 }
 0x12c   :  { %375 = vrot.lane.b32.xlu0 %v3234_v25, %s3573_s20 }
 0x12d   :  { %v3236_v28 = vpop.eup %3235 }
 0x12e   :  { %v365_v29 = vadd.f32 1.0, %v3236_v28 }
 0x130   :  { %370 = vrot.lane.b32.xlu0 %v284_v26, %s3574_s7  ;;  %3237 = vrcp.f32 %v365_v29 }
 0x13d   :  { %v3238_v30 = vpop.eup %3237 }
 0x19e   :  { %v376_v31 = vpop.permute.xlu0 %375 }
 0x19f   :  { %v378_v32 = vmul.f32 %v3238_v30, %v376_v31 }
 0x1a1   :  { %380 = vrot.lane.b32.xlu1 %v378_v32, %s3574_s7 }
 0x1a2   :  { %v371_v33 = vpop.permute.xlu0 %370 }
 0x1a3   :  { %v373_v34 = vmul.f32 %v3238_v30, %v371_v33 }
 0x213   :  { %v381_v35 = vpop.permute.xlu1 %380 }
 0x214   :  { %v3762_v36 = vadd.f32 %v381_v35, %v373_v34 }
 0x216   :  { %3239 = vtanh.f32 %v3762_v36 }
 0x223   :  { %v3240_v43 = vpop.eup %3239 }
 0x224   :  { %386 = vrot.lane.b32.xlu1 %v3240_v43, %s3573_s20 }
 0x296   :  { %v387_v44 = vpop.permute.xlu1 %386 }
 0x297   :  { %v389_v45 = vmul.f32 %v3238_v30, %v387_v44 }
 0x299   :  { %397 = vrot.lane.b32.xlu0 %v389_v45, %s3574_s7 }
 0x30b   :  { %v398_v47 = vpop.permute.xlu0 %397 }
 0x30c   :  { %2949 = vmatmul.mubr.msk.f32.vlgmr.msra.gmra.mxu1 %vm287_vm2, %v398_v47  ;;  %2960 = vmatmul.mubr.msk.f32.vlgmr.msra.gmra.mxu0 %vm287_vm2, %v398_v47 }
 0x30d   :  { %2974 = vmatpush3.msra.mxu0 %v3805_v46  ;;  %2981 = vmatprep.mubr.msk.f32.mxu0 %vm3572_vm1, %v3571_v6 }
 0x30e   :  { %2975 = vmatprep.subr.mxu0 %v3571_v6  ;;  %2963 = vmatpush3.msra.mxu1 %v3768_v37 }
 0x30f   :  { %2976 = vmatpush3.msra.mxu0 %v3809_v48  ;;  %2964 = vmatprep.subr.mxu1 %v3571_v6 }
 0x310   :  { %2977 = vmatprep.subr.mxu0 %v3571_v6  ;;  %2965 = vmatpush3.msra.mxu1 %v3781_v40 }
 0x311   :  { %2978 = vmatpush3.msra.mxu0 %v3815_v49  ;;  %2966 = vmatprep.subr.mxu1 %v3571_v6 }
 0x312   :  { %2979 = vmatprep.subr.mxu0 %v3571_v6  ;;  %2967 = vmatpush3.msra.mxu1 %v3788_v41 }
 0x313   :  { %2980 = vmatpush3.msra.mxu0 %v3821_v50  ;;  %2968 = vmatprep.subr.mxu1 %v3571_v6 }
 0x314   :  { %2982 = vmatmul.mubr.msk.f32.vlgmr.msra.gmra.mxu0 %vm287_vm2, %v283_v51  ;;  %2969 = vmatpush3.msra.mxu1 %v3797_v42  ;;  %v253_v51 = vadd.f32 %v3754_v19, %v3848_v53 }
 0x315   :  { %2970 = vmatprep.mubr.msk.f32.mxu1 %vm3572_vm1, %v3571_v6  ;;  %2984 = vmatprep.subr.mxu1 %v3571_v6 }
 0x316   :  { %2995 = vmatprep.subr.mxu0 %v3571_v6  ;;  %3003 = vmatprep.mubr.msk.f32.mxu0 %vm3572_vm1, %v3571_v6 }
 0x317   :  { %2996 = vmatpush3.msra.mxu0 %v3768_v37 }
 0x318   :  { %2997 = vmatprep.subr.mxu0 %v3571_v6 }
 0x319   :  { %2998 = vmatpush3.msra.mxu0 %v3781_v40 }
 0x31a   :  { %2999 = vmatprep.subr.mxu0 %v3571_v6 }
 0x31b   :  { %3000 = vmatpush3.msra.mxu0 %v3788_v41 }
 0x31c   :  { %3001 = vmatprep.subr.mxu0 %v3571_v6 }
 0x31d   :  { %3002 = vmatpush3.msra.mxu0 %v3797_v42 }
 0x31e   :  { %3017 = vmatprep.subr.mxu0 %v3571_v6 }
 0x3cc   :  { %v467_v55 = vpop.f32.mrf.mxu1  ;;  %v537_v56 = vpop.f32.mrf.mxu0 }
 0x3cd   :  { %v541_v57 = vadd.f32 %v537_v56, %v248_v54  ;;  %v468_v61 = vadd.f32 %v3852_v60, %v467_v55 }
 0x3ce   :  { %v2950_v58 = vpop.f32.mrf.mxu1  ;;  %v2961_v59 = vpop.f32.mrf.mxu0 }
 0x3cf   :  { %3241 = vtanh.f32 %v541_v57  ;;  %v2726_v5 = vmul.f32 -1.442695, %v541_v57 }
 0x3d4   :  { %v710_v62 = vpop.f32.mrf.mxu0 }
 0x3d5   :  { %v714_v63 = vadd.f32 %v710_v62, %v468_v61 }
 0x3d6   :  { %v2983_v0 = vpop.f32.mrf.mxu0 }
 0x3d7   :  { %3243 = vtanh.f32 %v714_v63  ;;  %v2729_v7 = vmul.f32 -1.442695, %v714_v63 }
 0x3d8   :  { %3245 = vpow2.f32 %v2726_v5 }
 0x3d9   :  { %3247 = vpow2.f32 %v2729_v7 }
 0x3dc   :  { %v3242_v1 = vpop.eup %3241 }
 0x3dd   :  { %551 = vrot.lane.b32.xlu1 %v3242_v1, %s3573_s20 }
 0x3e4   :  { %v3244_v2 = vpop.eup %3243 }
 0x3e5   :  { %728 = vrot.lane.b32.xlu0 %v3244_v2, %s3573_s20  ;;  %v3246_v8 = vpop.eup %3245 }
 0x3e6   :  { %v545_v10 = vadd.f32 1.0, %v3246_v8  ;;  %v3248_v13 = vpop.eup %3247 }
 0x3e7   :  { %v718_v16 = vadd.f32 1.0, %v3248_v13 }
 0x3e8   :  { %3249 = vrcp.f32 %v545_v10 }
 0x3e9   :  { %723 = vrot.lane.b32.xlu0 %v286_v3, %s3574_s7  ;;  %3251 = vrcp.f32 %v718_v16 }
 0x3f5   :  { %v3250_v18 = vpop.eup %3249 }
 0x3f6   :  { %v3252_v23 = vpop.eup %3251  ;;  %v549_v26 = vmul.f32 %v3250_v18, %v3762_v36 }
 0x44f   :  { %v552_v21 = vpop.permute.xlu1 %551 }
 0x450   :  { %v554_v22 = vmul.f32 %v3250_v18, %v552_v21 }
 0x452   :  { %556 = vrot.lane.b32.xlu1 %v554_v22, %s3574_s7 }
 0x457   :  { %v729_v24 = vpop.permute.xlu0 %728 }
 0x458   :  { %v731_v25 = vmul.f32 %v3252_v23, %v729_v24 }
 0x45a   :  { %733 = vrot.lane.b32.xlu1 %v731_v25, %s3574_s7 }
 0x45b   :  { %v724_v29 = vpop.permute.xlu0 %723 }
 0x45c   :  { %v726_v30 = vmul.f32 %v3252_v23, %v724_v29 }
 0x4c4   :  { %v557_v27 = vpop.permute.xlu1 %556 }
 0x4c5   :  { %v3861_v28 = vadd.f32 %v557_v27, %v549_v26 }
 0x4c7   :  { %3253 = vtanh.f32 %v3861_v28 }
 0x4cc   :  { %v734_v31 = vpop.permute.xlu1 %733 }
 0x4cd   :  { %v3864_v32 = vadd.f32 %v734_v31, %v726_v30 }
 0x4cf   :  { %3255 = vtanh.f32 %v3864_v32 }
 0x4d4   :  { %v3254_v33 = vpop.eup %3253 }
 0x4d5   :  { %562 = vrot.lane.b32.xlu0 %v3254_v33, %s3573_s20 }
 0x4dc   :  { %v3256_v34 = vpop.eup %3255 }
 0x4dd   :  { %739 = vrot.lane.b32.xlu1 %v3256_v34, %s3573_s20 }
 0x547   :  { %v563_v35 = vpop.permute.xlu0 %562 }
 0x548   :  { %v565_v36 = vmul.f32 %v3250_v18, %v563_v35 }
 0x54a   :  { %567 = vrot.lane.b32.xlu0 %v565_v36, %s3574_s7 }
 0x54f   :  { %v740_v38 = vpop.permute.xlu1 %739 }
 0x550   :  { %v742_v39 = vmul.f32 %v3252_v23, %v740_v38  ;;  %v258_v38 = vadd.f32 %v3846_v52, %v3754_v19 }
 0x552   :  { %744 = vrot.lane.b32.xlu1 %v742_v39, %s3574_s7 }
 0x5bc   :  { %v568_v43 = vpop.permute.xlu0 %567 }
 0x5bd   :  { %2971 = vmatmul.mubr.msk.f32.vlgmr.msra.gmra.mxu1 %vm287_vm2, %v568_v43 }
 0x5be   :  { %2985 = vmatpush3.msra.mxu1 %v3689_v4  ;;  %2992 = vmatprep.mubr.msk.f32.mxu1 %vm3572_vm1, %v3571_v6 }
 0x5bf   :  { %2986 = vmatprep.subr.mxu1 %v3571_v6 }
 0x5c0   :  { %2987 = vmatpush3.msra.mxu1 %v3706_v9 }
 0x5c1   :  { %2988 = vmatprep.subr.mxu1 %v3571_v6 }
 0x5c2   :  { %2989 = vmatpush3.msra.mxu1 %v3718_v11 }
 0x5c3   :  { %2990 = vmatprep.subr.mxu1 %v3571_v6 }
 0x5c4   :  { %2991 = vmatpush3.msra.mxu1 %v3727_v12  ;;  %v745_v44 = vpop.permute.xlu1 %744 }
 0x5c5   :  { %747 = vst.msk [vmem:[#allocation2] sm:$0xff] %vm287_vm2, %v745_v44  ;;  %2993 = vmatmul.mubr.msk.f32.vlgmr.msra.gmra.mxu1 %vm287_vm2, %v568_v43  ;;  %3006 = vmatprep.subr.mxu1 %v3571_v6 }
 0x5c6   :  { %3007 = vmatpush3.msra.mxu1 %v3805_v46  ;;  %3014 = vmatprep.mubr.msk.f32.mxu1 %vm3572_vm1, %v3571_v6 }
 0x5c7   :  { %3008 = vmatprep.subr.mxu1 %v3571_v6 }
 0x5c8   :  { %3009 = vmatpush3.msra.mxu1 %v3809_v48 }
 0x5c9   :  { %3010 = vmatprep.subr.mxu1 %v3571_v6 }
 0x5ca   :  { %3011 = vmatpush3.msra.mxu1 %v3815_v49 }
 0x5cb   :  { %3012 = vmatprep.subr.mxu1 %v3571_v6 }
 0x5cc   :  { %3013 = vmatpush3.msra.mxu1 %v3821_v50 }
 0x5cd   :  { %3015 = vmatmul.mubr.msk.f32.vlgmr.msra.gmra.mxu1 %vm287_vm2, %v745_v44  ;;  %3028 = vmatprep.subr.mxu1 %v3571_v6 }
 0x5ce   :  { %3029 = vmatpush3.msra.mxu1 %v3768_v37  ;;  %3036 = vmatprep.mubr.msk.f32.mxu1 %vm3572_vm1, %v3571_v6 }
 0x5cf   :  { %3030 = vmatprep.subr.mxu1 %v3571_v6 }
 0x5d0   :  { %3031 = vmatpush3.msra.mxu1 %v3781_v40 }
 0x5d1   :  { %3032 = vmatprep.subr.mxu1 %v3571_v6 }
 0x5d2   :  { %3033 = vmatpush3.msra.mxu1 %v3788_v41 }
 0x5d3   :  { %3034 = vmatprep.subr.mxu1 %v3571_v6 }
 0x5d4   :  { %3035 = vmatpush3.msra.mxu1 %v3797_v42 }
 0x5d5   :  { %3050 = vmatprep.subr.mxu1 %v3571_v6 }
 0x67d   :  { %v637_v45 = vpop.f32.mrf.mxu1 }
 0x67e   :  { %v638_v57 = vadd.f32 %v3852_v60, %v637_v45 }
 0x67f   :  { %v2972_v47 = vpop.f32.mrf.mxu1 }
 0x685   :  { %v814_v54 = vpop.f32.mrf.mxu1 }
 0x686   :  { %v818_v55 = vadd.f32 %v814_v54, %v253_v51 }
 0x687   :  { %v2994_v56 = vpop.f32.mrf.mxu1 }
 0x688   :  { %3257 = vtanh.f32 %v818_v55  ;;  %v2731_v0 = vmul.f32 -1.442695, %v818_v55 }
 0x68d   :  { %v986_v58 = vpop.f32.mrf.mxu1 }
 0x68e   :  { %v990_v59 = vadd.f32 %v986_v58, %v638_v57 }
 0x68f   :  { %v3016_v61 = vpop.f32.mrf.mxu1 }
 0x690   :  { %3259 = vtanh.f32 %v990_v59  ;;  %v2734_v1 = vmul.f32 -1.442695, %v990_v59 }
 0x691   :  { %3261 = vpow2.f32 %v2731_v0 }
 0x692   :  { %3263 = vpow2.f32 %v2734_v1 }
 0x695   :  { %v3258_v62 = vpop.eup %3257 }
 0x696   :  { %828 = vrot.lane.b32.xlu0 %v3258_v62, %s3573_s20 }
 0x69d   :  { %v3260_v63 = vpop.eup %3259 }
 0x69e   :  { %1000 = vrot.lane.b32.xlu1 %v3260_v63, %s3573_s20  ;;  %v3262_v53 = vpop.eup %3261 }
 0x69f   :  { %v822_v2 = vadd.f32 1.0, %v3262_v53  ;;  %v3264_v3 = vpop.eup %3263 }
 0x6a0   :  { %v994_v5 = vadd.f32 1.0, %v3264_v3 }
 0x6a1   :  { %3265 = vrcp.f32 %v822_v2 }
 0x6a2   :  { %3267 = vrcp.f32 %v994_v5 }
 0x6ae   :  { %v3266_v7 = vpop.eup %3265 }
 0x6af   :  { %v3268_v13 = vpop.eup %3267  ;;  %v826_v21 = vmul.f32 %v3266_v7, %v3861_v28 }
 0x6b0   :  { %v998_v24 = vmul.f32 %v3268_v13, %v3864_v32 }
 0x708   :  { %v829_v8 = vpop.permute.xlu0 %828 }
 0x709   :  { %v831_v10 = vmul.f32 %v3266_v7, %v829_v8 }
 0x70b   :  { %833 = vrot.lane.b32.xlu0 %v831_v10, %s3574_s7 }
 0x710   :  { %v1001_v16 = vpop.permute.xlu1 %1000 }
 0x711   :  { %v1003_v18 = vmul.f32 %v3268_v13, %v1001_v16 }
 0x713   :  { %1005 = vrot.lane.b32.xlu1 %v1003_v18, %s3574_s7 }
 0x77d   :  { %v834_v22 = vpop.permute.xlu0 %833 }
 0x77e   :  { %v3913_v23 = vadd.f32 %v834_v22, %v826_v21 }
 0x780   :  { %3269 = vtanh.f32 %v3913_v23 }
 0x785   :  { %v1006_v25 = vpop.permute.xlu1 %1005 }
 0x786   :  { %v3917_v26 = vadd.f32 %v1006_v25, %v998_v24 }
 0x788   :  { %3271 = vtanh.f32 %v3917_v26 }
 0x78d   :  { %v3270_v27 = vpop.eup %3269 }
 0x78e   :  { %839 = vrot.lane.b32.xlu0 %v3270_v27, %s3573_s20 }
 0x795   :  { %v3272_v29 = vpop.eup %3271 }
 0x796   :  { %1011 = vrot.lane.b32.xlu1 %v3272_v29, %s3573_s20 }
 0x800   :  { %v840_v30 = vpop.permute.xlu0 %839 }
 0x801   :  { %v842_v28 = vmul.f32 %v3266_v7, %v840_v30 }
 0x803   :  { %844 = vrot.lane.b32.xlu0 %v842_v28, %s3574_s7  ;;  %v263_v28 = vadd.f32 %v3754_v19, %v3748_v15 }
 0x808   :  { %v1012_v31 = vpop.permute.xlu1 %1011 }
 0x809   :  { %v1014_v33 = vmul.f32 %v3268_v13, %v1012_v31 }
 0x80b   :  { %1016 = vrot.lane.b32.xlu1 %v1014_v33, %s3574_s7 }
 0x875   :  { %v845_v32 = vpop.permute.xlu0 %844 }
 0x876   :  { %3004 = vmatmul.mubr.msk.f32.vlgmr.msra.gmra.mxu0 %vm287_vm2, %v845_v32 }
 0x877   :  { %3018 = vmatpush3.msra.mxu0 %v3689_v4  ;;  %3025 = vmatprep.mubr.msk.f32.mxu0 %vm3572_vm1, %v3571_v6 }
 0x878   :  { %3019 = vmatprep.subr.mxu0 %v3571_v6 }
 0x879   :  { %3020 = vmatpush3.msra.mxu0 %v3706_v9 }
 0x87a   :  { %3021 = vmatprep.subr.mxu0 %v3571_v6 }
 0x87b   :  { %3022 = vmatpush3.msra.mxu0 %v3718_v11 }
 0x87c   :  { %3023 = vmatprep.subr.mxu0 %v3571_v6 }
 0x87d   :  { %3024 = vmatpush3.msra.mxu0 %v3727_v12  ;;  %v1017_v34 = vpop.permute.xlu1 %1016 }
 0x87e   :  { %3026 = vmatmul.mubr.msk.f32.vlgmr.msra.gmra.mxu0 %vm287_vm2, %v845_v32  ;;  %3039 = vmatprep.subr.mxu0 %v3571_v6  ;;  %1019 = vst.msk [vmem:[#allocation2 + $0x8] sm:$0xff] %vm287_vm2, %v1017_v34 }
 0x87f   :  { %3040 = vmatpush3.msra.mxu0 %v3805_v46  ;;  %3047 = vmatprep.mubr.msk.f32.mxu0 %vm3572_vm1, %v3571_v6 }
 0x880   :  { %3041 = vmatprep.subr.mxu0 %v3571_v6 }
 0x881   :  { %3042 = vmatpush3.msra.mxu0 %v3809_v48 }
 0x882   :  { %3043 = vmatprep.subr.mxu0 %v3571_v6 }
 0x883   :  { %3044 = vmatpush3.msra.mxu0 %v3815_v49 }
 0x884   :  { %3045 = vmatprep.subr.mxu0 %v3571_v6 }
 0x885   :  { %3046 = vmatpush3.msra.mxu0 %v3821_v50 }
 0x886   :  { %3048 = vmatmul.mubr.msk.f32.vlgmr.msra.gmra.mxu0 %vm287_vm2, %v1017_v34  ;;  %3061 = vmatprep.subr.mxu0 %v3571_v6 }
 0x887   :  { %3062 = vmatpush3.msra.mxu0 %v3768_v37  ;;  %3069 = vmatprep.mubr.msk.f32.mxu0 %vm3572_vm1, %v3571_v6 }
 0x888   :  { %3063 = vmatprep.subr.mxu0 %v3571_v6 }
 0x889   :  { %3064 = vmatpush3.msra.mxu0 %v3781_v40 }
 0x88a   :  { %3065 = vmatprep.subr.mxu0 %v3571_v6 }
 0x88b   :  { %3066 = vmatpush3.msra.mxu0 %v3788_v41 }
 0x88c   :  { %3067 = vmatprep.subr.mxu0 %v3571_v6 }
 0x88d   :  { %3068 = vmatpush3.msra.mxu0 %v3797_v42 }
 0x88e   :  { %3083 = vmatprep.subr.mxu0 %v3571_v6 }
 0x936   :  { %v914_v35 = vpop.f32.mrf.mxu0 }
 0x937   :  { %v915_v45 = vadd.f32 %v3852_v60, %v914_v35 }
 0x938   :  { %v3005_v36 = vpop.f32.mrf.mxu0 }
 0x93e   :  { %v1086_v39 = vpop.f32.mrf.mxu0 }
 0x93f   :  { %v1090_v43 = vadd.f32 %v1086_v39, %v258_v38 }
 0x940   :  { %v3027_v44 = vpop.f32.mrf.mxu0 }
 0x941   :  { %3273 = vtanh.f32 %v1090_v43  ;;  %v2736_v57 = vmul.f32 -1.442695, %v1090_v43 }
 0x946   :  { %v1258_v47 = vpop.f32.mrf.mxu0 }
 0x947   :  { %v1262_v51 = vadd.f32 %v1258_v47, %v915_v45 }
 0x948   :  { %v3049_v54 = vpop.f32.mrf.mxu0 }
 0x949   :  { %3275 = vtanh.f32 %v1262_v51  ;;  %v2739_v58 = vmul.f32 -1.442695, %v1262_v51 }
 0x94a   :  { %3277 = vpow2.f32 %v2736_v57 }
 0x94b   :  { %3279 = vpow2.f32 %v2739_v58 }
 0x94e   :  { %v3274_v55 = vpop.eup %3273 }
 0x94f   :  { %1100 = vrot.lane.b32.xlu0 %v3274_v55, %s3573_s20 }
 0x956   :  { %v3276_v56 = vpop.eup %3275 }
 0x957   :  { %1272 = vrot.lane.b32.xlu1 %v3276_v56, %s3573_s20  ;;  %v3278_v52 = vpop.eup %3277 }
 0x958   :  { %v1094_v59 = vadd.f32 1.0, %v3278_v52  ;;  %v3280_v61 = vpop.eup %3279 }
 0x959   :  { %v1266_v62 = vadd.f32 1.0, %v3280_v61 }
 0x95a   :  { %3281 = vrcp.f32 %v1094_v59 }
 0x95b   :  { %3283 = vrcp.f32 %v1266_v62 }
 0x967   :  { %v3282_v63 = vpop.eup %3281 }
 0x968   :  { %v3284_v53 = vpop.eup %3283  ;;  %v1098_v5 = vmul.f32 %v3282_v63, %v3913_v23 }
 0x969   :  { %v1270_v10 = vmul.f32 %v3284_v53, %v3917_v26 }
 0x9c1   :  { %v1101_v0 = vpop.permute.xlu0 %1100 }
 0x9c2   :  { %v1103_v1 = vmul.f32 %v3282_v63, %v1101_v0 }
 0x9c4   :  { %1105 = vrot.lane.b32.xlu0 %v1103_v1, %s3574_s7 }
 0x9c9   :  { %v1273_v2 = vpop.permute.xlu1 %1272 }
 0x9ca   :  { %v1275_v3 = vmul.f32 %v3284_v53, %v1273_v2 }
 0x9cc   :  { %1277 = vrot.lane.b32.xlu1 %v1275_v3, %s3574_s7 }
 0xa36   :  { %v1106_v7 = vpop.permute.xlu0 %1105 }
 0xa37   :  { %v3966_v8 = vadd.f32 %v1106_v7, %v1098_v5 }
 0xa39   :  { %3285 = vtanh.f32 %v3966_v8 }
 0xa3e   :  { %v1278_v13 = vpop.permute.xlu1 %1277 }
 0xa3f   :  { %v3970_v16 = vadd.f32 %v1278_v13, %v1270_v10 }
 0xa41   :  { %3287 = vtanh.f32 %v3970_v16 }
 0xa46   :  { %v3286_v18 = vpop.eup %3285 }
 0xa47   :  { %1111 = vrot.lane.b32.xlu0 %v3286_v18, %s3573_s20 }
 0xa4e   :  { %v3288_v21 = vpop.eup %3287 }
 0xa4f   :  { %1283 = vrot.lane.b32.xlu1 %v3288_v21, %s3573_s20 }
 0xab9   :  { %v1112_v22 = vpop.permute.xlu0 %1111 }
 0xaba   :  { %v1114_v23 = vmul.f32 %v3282_v63, %v1112_v22 }
 0xabc   :  { %1116 = vrot.lane.b32.xlu0 %v1114_v23, %s3574_s7 }
 0xac1   :  { %v1284_v24 = vpop.permute.xlu1 %1283 }
 0xac2   :  { %v1286_v25 = vmul.f32 %v3284_v53, %v1284_v24 }
 0xac4   :  { %1288 = vrot.lane.b32.xlu1 %v1286_v25, %s3574_s7 }
 0xb2e   :  { %v1117_v26 = vpop.permute.xlu0 %1116 }
 0xb2f   :  { %3037 = vmatmul.mubr.msk.f32.vlgmr.msra.gmra.mxu1 %vm287_vm2, %v1117_v26 }
 0xb30   :  { %3051 = vmatpush3.msra.mxu1 %v3689_v4  ;;  %3058 = vmatprep.mubr.msk.f32.mxu1 %vm3572_vm1, %v3571_v6 }
 0xb31   :  { %3052 = vmatprep.subr.mxu1 %v3571_v6 }
 0xb32   :  { %3053 = vmatpush3.msra.mxu1 %v3706_v9 }
 0xb33   :  { %3054 = vmatprep.subr.mxu1 %v3571_v6 }
 0xb34   :  { %3055 = vmatpush3.msra.mxu1 %v3718_v11 }
 0xb35   :  { %3056 = vmatprep.subr.mxu1 %v3571_v6 }
 0xb36   :  { %3057 = vmatpush3.msra.mxu1 %v3727_v12  ;;  %v1289_v27 = vpop.permute.xlu1 %1288 }
 0xb37   :  { %3059 = vmatmul.mubr.msk.f32.vlgmr.msra.gmra.mxu1 %vm287_vm2, %v1117_v26  ;;  %3072 = vmatprep.subr.mxu1 %v3571_v6  ;;  %1291 = vst.msk [vmem:[#allocation2 + $0x10] sm:$0xff] %vm287_vm2, %v1289_v27 }
 0xb38   :  { %3073 = vmatpush3.msra.mxu1 %v3805_v46  ;;  %3080 = vmatprep.mubr.msk.f32.mxu1 %vm3572_vm1, %v3571_v6 }
 0xb39   :  { %3074 = vmatprep.subr.mxu1 %v3571_v6 }
 0xb3a   :  { %3075 = vmatpush3.msra.mxu1 %v3809_v48 }
 0xb3b   :  { %3076 = vmatprep.subr.mxu1 %v3571_v6 }
 0xb3c   :  { %3077 = vmatpush3.msra.mxu1 %v3815_v49 }
 0xb3d   :  { %3078 = vmatprep.subr.mxu1 %v3571_v6 }
 0xb3e   :  { %3079 = vmatpush3.msra.mxu1 %v3821_v50 }
 0xb3f   :  { %3081 = vmatmul.mubr.msk.f32.vlgmr.msra.gmra.mxu1 %vm287_vm2, %v1289_v27  ;;  %3094 = vmatprep.subr.mxu1 %v3571_v6 }
 0xb40   :  { %3095 = vmatpush3.msra.mxu1 %v3768_v37  ;;  %3102 = vmatprep.mubr.msk.f32.mxu1 %vm3572_vm1, %v3571_v6 }
 0xb41   :  { %3096 = vmatprep.subr.mxu1 %v3571_v6 }
 0xb42   :  { %3097 = vmatpush3.msra.mxu1 %v3781_v40 }
 0xb43   :  { %3098 = vmatprep.subr.mxu1 %v3571_v6 }
 0xb44   :  { %3099 = vmatpush3.msra.mxu1 %v3788_v41 }
 0xb45   :  { %3100 = vmatprep.subr.mxu1 %v3571_v6 }
 0xb46   :  { %3101 = vmatpush3.msra.mxu1 %v3797_v42 }
 0xb47   :  { %3116 = vmatprep.subr.mxu1 %v3571_v6 }
 0xbef   :  { %v1186_v29 = vpop.f32.mrf.mxu1 }
 0xbf0   :  { %v1187_v34 = vadd.f32 %v3852_v60, %v1186_v29 }
 0xbf1   :  { %v3038_v30 = vpop.f32.mrf.mxu1 }
 0xbf7   :  { %v1358_v31 = vpop.f32.mrf.mxu1 }
 0xbf8   :  { %v1362_v33 = vadd.f32 %v1358_v31, %v263_v28 }
 0xbf9   :  { %v3060_v32 = vpop.f32.mrf.mxu1 }
 0xbfa   :  { %3289 = vtanh.f32 %v1362_v33  ;;  %v2741_v44 = vmul.f32 -1.442695, %v1362_v33 }
 0xbff   :  { %v1530_v35 = vpop.f32.mrf.mxu1 }
 0xc00   :  { %v1534_v36 = vadd.f32 %v1530_v35, %v1187_v34 }
 0xc01   :  { %v3082_v38 = vpop.f32.mrf.mxu1 }
 0xc02   :  { %3291 = vtanh.f32 %v1534_v36  ;;  %v2744_v45 = vmul.f32 -1.442695, %v1534_v36 }
 0xc03   :  { %3293 = vpow2.f32 %v2741_v44 }
 0xc04   :  { %3295 = vpow2.f32 %v2744_v45 }
 0xc07   :  { %v3290_v39 = vpop.eup %3289 }
 0xc08   :  { %1372 = vrot.lane.b32.xlu0 %v3290_v39, %s3573_s20 }
 0xc0f   :  { %v3292_v43 = vpop.eup %3291 }
 0xc10   :  { %1544 = vrot.lane.b32.xlu1 %v3292_v43, %s3573_s20  ;;  %v3294_v15 = vpop.eup %3293 }
 0xc11   :  { %v1366_v47 = vadd.f32 1.0, %v3294_v15  ;;  %v3296_v51 = vpop.eup %3295 }
 0xc12   :  { %v1538_v54 = vadd.f32 1.0, %v3296_v51 }
 0xc13   :  { %3297 = vrcp.f32 %v1366_v47 }
 0xc14   :  { %3299 = vrcp.f32 %v1538_v54 }
 0xc20   :  { %v3298_v55 = vpop.eup %3297 }
 0xc21   :  { %v3300_v58 = vpop.eup %3299  ;;  %v1370_v61 = vmul.f32 %v3298_v55, %v3966_v8 }
 0xc22   :  { %v1542_v0 = vmul.f32 %v3300_v58, %v3970_v16 }
 0xc7a   :  { %v1373_v56 = vpop.permute.xlu0 %1372 }
 0xc7b   :  { %v1375_v57 = vmul.f32 %v3298_v55, %v1373_v56 }
 0xc7d   :  { %1377 = vrot.lane.b32.xlu0 %v1375_v57, %s3574_s7 }
 0xc82   :  { %v1545_v52 = vpop.permute.xlu1 %1544 }
 0xc83   :  { %v1547_v59 = vmul.f32 %v3300_v58, %v1545_v52 }
 0xc85   :  { %1549 = vrot.lane.b32.xlu1 %v1547_v59, %s3574_s7  ;;  %v4087_v59 = vld [vmem:[%s4279_s2 + $0x18] sm:$0xff] }
 0xcef   :  { %v1378_v62 = vpop.permute.xlu0 %1377 }
 0xcf0   :  { %v4019_v63 = vadd.f32 %v1378_v62, %v1370_v61  ;;  %v4096_v61 = vld [vmem:[%s4279_s2 + $0x10] sm:$0xff]  ;;  %v4103_v62 = vld [vmem:[%s4279_s2 + $0x8] sm:$0xff] }
 0xcf2   :  { %3301 = vtanh.f32 %v4019_v63 }
 0xcf7   :  { %v1550_v1 = vpop.permute.xlu1 %1549 }
 0xcf8   :  { %v4023_v53 = vadd.f32 %v1550_v1, %v1542_v0 }
 0xcfa   :  { %3303 = vtanh.f32 %v4023_v53 }
 0xcff   :  { %v3302_v2 = vpop.eup %3301 }
 0xd00   :  { %1383 = vrot.lane.b32.xlu0 %v3302_v2, %s3573_s20 }
 0xd07   :  { %v3304_v3 = vpop.eup %3303 }
 0xd08   :  { %1555 = vrot.lane.b32.xlu1 %v3304_v3, %s3573_s20 }
 0xd72   :  { %v1384_v5 = vpop.permute.xlu0 %1383 }
 0xd73   :  { %v1386_v7 = vmul.f32 %v3298_v55, %v1384_v5 }
 0xd75   :  { %1388 = vrot.lane.b32.xlu0 %v1386_v7, %s3574_s7 }
 0xd7a   :  { %v1556_v8 = vpop.permute.xlu1 %1555 }
 0xd7b   :  { %v1558_v10 = vmul.f32 %v3300_v58, %v1556_v8 }
 0xd7d   :  { %1560 = vrot.lane.b32.xlu1 %v1558_v10, %s3574_s7 }
 0xde7   :  { %v1389_v13 = vpop.permute.xlu0 %1388 }
 0xde8   :  { %3070 = vmatmul.mubr.msk.f32.vlgmr.msra.gmra.mxu0 %vm287_vm2, %v1389_v13 }
 0xde9   :  { %3084 = vmatpush3.msra.mxu0 %v3689_v4  ;;  %3091 = vmatprep.mubr.msk.f32.mxu0 %vm3572_vm1, %v3571_v6 }
 0xdea   :  { %3085 = vmatprep.subr.mxu0 %v3571_v6 }
 0xdeb   :  { %3086 = vmatpush3.msra.mxu0 %v3706_v9 }
 0xdec   :  { %3087 = vmatprep.subr.mxu0 %v3571_v6 }
 0xded   :  { %3088 = vmatpush3.msra.mxu0 %v3718_v11  ;;  %v268_v11 = vadd.f32 %v3746_v14, %v3754_v19 }
 0xdee   :  { %3089 = vmatprep.subr.mxu0 %v3571_v6 }
 0xdef   :  { %3090 = vmatpush3.msra.mxu0 %v3727_v12  ;;  %v1561_v16 = vpop.permute.xlu1 %1560 }
 0xdf0   :  { %3092 = vmatmul.mubr.msk.f32.vlgmr.msra.gmra.mxu0 %vm287_vm2, %v1389_v13  ;;  %3105 = vmatprep.subr.mxu0 %v3571_v6  ;;  %1563 = vst.msk [vmem:[#allocation2 + $0x18] sm:$0xff] %vm287_vm2, %v1561_v16 }
 0xdf1   :  { %3106 = vmatpush3.msra.mxu0 %v3805_v46  ;;  %3113 = vmatprep.mubr.msk.f32.mxu0 %vm3572_vm1, %v3571_v6 }
 0xdf2   :  { %3107 = vmatprep.subr.mxu0 %v3571_v6 }
 0xdf3   :  { %3108 = vmatpush3.msra.mxu0 %v3809_v48 }
 0xdf4   :  { %3109 = vmatprep.subr.mxu0 %v3571_v6 }
 0xdf5   :  { %3110 = vmatpush3.msra.mxu0 %v3815_v49 }
 0xdf6   :  { %3111 = vmatprep.subr.mxu0 %v3571_v6 }
 0xdf7   :  { %3112 = vmatpush3.msra.mxu0 %v3821_v50 }
 0xdf8   :  { %3114 = vmatmul.mubr.msk.f32.vlgmr.msra.gmra.mxu0 %vm287_vm2, %v1561_v16  ;;  %3127 = vmatprep.subr.mxu0 %v3571_v6 }
 0xdf9   :  { %3128 = vmatpush3.msra.mxu0 %v3768_v37  ;;  %3135 = vmatprep.mubr.msk.f32.mxu0 %vm3572_vm1, %v3571_v6 }
 0xdfa   :  { %3129 = vmatprep.subr.mxu0 %v3571_v6 }
 0xdfb   :  { %3130 = vmatpush3.msra.mxu0 %v3781_v40 }
 0xdfc   :  { %3131 = vmatprep.subr.mxu0 %v3571_v6 }
 0xdfd   :  { %3132 = vmatpush3.msra.mxu0 %v3788_v41 }
 0xdfe   :  { %3133 = vmatprep.subr.mxu0 %v3571_v6 }
 0xdff   :  { %3134 = vmatpush3.msra.mxu0 %v3797_v42 }
 0xe00   :  { %3149 = vmatprep.subr.mxu0 %v3571_v6 }
 0xea8   :  { %v1458_v4 = vpop.f32.mrf.mxu0 }
 0xea9   :  { %v1459_v22 = vadd.f32 %v3852_v60, %v1458_v4 }
 0xeaa   :  { %v3071_v9 = vpop.f32.mrf.mxu0 }
 0xeb0   :  { %v1630_v12 = vpop.f32.mrf.mxu0 }
 0xeb1   :  { %v1634_v18 = vadd.f32 %v1630_v12, %v268_v11 }
 0xeb2   :  { %v3093_v21 = vpop.f32.mrf.mxu0 }
 0xeb3   :  { %3305 = vtanh.f32 %v1634_v18  ;;  %v2746_v29 = vmul.f32 -1.442695, %v1634_v18 }
 0xeb8   :  { %v1802_v23 = vpop.f32.mrf.mxu0 }
 0xeb9   :  { %v1806_v24 = vadd.f32 %v1802_v23, %v1459_v22 }
 0xeba   :  { %v3115_v25 = vpop.f32.mrf.mxu0 }
 0xebb   :  { %3307 = vtanh.f32 %v1806_v24  ;;  %v2749_v30 = vmul.f32 -1.442695, %v1806_v24 }
 0xebc   :  { %3309 = vpow2.f32 %v2746_v29 }
 0xebd   :  { %3311 = vpow2.f32 %v2749_v30 }
 0xec0   :  { %v3306_v26 = vpop.eup %3305 }
 0xec1   :  { %1644 = vrot.lane.b32.xlu0 %v3306_v26, %s3573_s20 }
 0xec8   :  { %v3308_v27 = vpop.eup %3307 }
 0xec9   :  { %1816 = vrot.lane.b32.xlu1 %v3308_v27, %s3573_s20  ;;  %v3310_v14 = vpop.eup %3309 }
 0xeca   :  { %v1638_v19 = vadd.f32 1.0, %v3310_v14  ;;  %v3312_v28 = vpop.eup %3311 }
 0xecb   :  { %v1810_v31 = vadd.f32 1.0, %v3312_v28 }
 0xecc   :  { %3313 = vrcp.f32 %v1638_v19 }
 0xecd   :  { %3315 = vrcp.f32 %v1810_v31 }
 0xed9   :  { %v3314_v33 = vpop.eup %3313 }
 0xeda   :  { %v3316_v35 = vpop.eup %3315  ;;  %v1642_v39 = vmul.f32 %v3314_v33, %v4019_v63  ;;  %v4110_v63 = vld [vmem:[%s4279_s2] sm:$0xff] }
 0xedb   :  { %v1814_v45 = vmul.f32 %v3316_v35, %v4023_v53 }
 0xf33   :  { %v1645_v32 = vpop.permute.xlu0 %1644 }
 0xf34   :  { %v1647_v34 = vmul.f32 %v3314_v33, %v1645_v32  ;;  %v4171_v32 = vld [vmem:[#allocation8 + $0x18] sm:$0xff] }
 0xf36   :  { %1649 = vrot.lane.b32.xlu0 %v1647_v34, %s3574_s7  ;;  %v4177_v34 = vld [vmem:[#allocation8 + $0x10] sm:$0xff] }
 0xf3b   :  { %v1817_v36 = vpop.permute.xlu1 %1816 }
 0xf3c   :  { %v1819_v38 = vmul.f32 %v3316_v35, %v1817_v36  ;;  %v4181_v36 = vld [vmem:[#allocation8 + $0x8] sm:$0xff] }
 0xf3e   :  { %1821 = vrot.lane.b32.xlu1 %v1819_v38, %s3574_s7  ;;  %v2516_v38 = vld [vmem:[%s4286_s9 + $0x18] sm:$0xff] }
 0xfa8   :  { %v1650_v43 = vpop.permute.xlu0 %1649 }
 0xfa9   :  { %v4072_v44 = vadd.f32 %v1650_v43, %v1642_v39  ;;  %v4188_v39 = vld [vmem:[#allocation8] sm:$0xff] }
 0xfab   :  { %3317 = vtanh.f32 %v4072_v44 }
 0xfb0   :  { %v1822_v15 = vpop.permute.xlu1 %1821 }
 0xfb1   :  { %v4076_v47 = vadd.f32 %v1822_v15, %v1814_v45  ;;  %v2514_v45 = vld [vmem:[%s4286_s9 + $0x8] sm:$0xff]  ;;  %v2513_v15 = vld [vmem:[%s4286_s9] sm:$0xff] }
 0xfb3   :  { %3319 = vtanh.f32 %v4076_v47 }
 0xfb8   :  { %v3318_v51 = vpop.eup %3317 }
 0xfb9   :  { %1655 = vrot.lane.b32.xlu0 %v3318_v51, %s3573_s20  ;;  %v2499_v51 = vld [vmem:[#allocation2 + $0x10] sm:$0xff] }
 0xfc0   :  { %v3320_v54 = vpop.eup %3319 }
 0xfc1   :  { %1827 = vrot.lane.b32.xlu1 %v3320_v54, %s3573_s20 }
0x102b   :  { %v1656_v55 = vpop.permute.xlu0 %1655 }
0x102c   :  { %v1658_v56 = vmul.f32 %v3314_v33, %v1656_v55  ;;  %v2507_v55 = vmax.f32 %v2499_v51, 0.0 }
0x102e   :  { %1660 = vrot.lane.b32.xlu0 %v1658_v56, %s3574_s7  ;;  %v2500_v56 = vld [vmem:[#allocation2 + $0x18] sm:$0xff] }
0x1033   :  { %v1828_v57 = vpop.permute.xlu1 %1827 }
0x1034   :  { %v1830_v58 = vmul.f32 %v3316_v35, %v1828_v57  ;;  %v2497_v35 = vld [vmem:[#allocation2] sm:$0xff] }
0x1035   :  { %v2505_v43 = vmax.f32 %v2497_v35, 0.0 }
0x1036   :  { %1832 = vrot.lane.b32.xlu1 %v1830_v58, %s3574_s7  ;;  %v2508_v58 = vmax.f32 %v2500_v56, 0.0 }
0x10a0   :  { %v1661_v52 = vpop.permute.xlu0 %1660 }
0x10a1   :  { %3103 = vmatmul.mubr.msk.f32.vlgmr.msra.gmra.mxu1 %vm287_vm2, %v1661_v52 }
0x10a2   :  { %3117 = vmatpush3.msra.mxu1 %v4087_v59  ;;  %3124 = vmatprep.mubr.msk.f32.mxu1 %vm3572_vm1, %v3571_v6 }
0x10a3   :  { %3118 = vmatprep.subr.mxu1 %v3571_v6 }
0x10a4   :  { %3119 = vmatpush3.msra.mxu1 %v4096_v61 }
0x10a5   :  { %3120 = vmatprep.subr.mxu1 %v3571_v6 }
0x10a6   :  { %3121 = vmatpush3.msra.mxu1 %v4103_v62 }
0x10a7   :  { %3122 = vmatprep.subr.mxu1 %v3571_v6 }
0x10a8   :  { %3123 = vmatpush3.msra.mxu1 %v4110_v63  ;;  %v1833_v0 = vpop.permute.xlu1 %1832 }
0x10a9   :  { %3125 = vmatmul.mubr.msk.f32.vlgmr.msra.gmra.mxu1 %vm287_vm2, %v1661_v52  ;;  %3138 = vmatprep.subr.mxu1 %v3571_v6  ;;  %1835 = vst.msk [vmem:[#allocation2 + $0x20] sm:$0xff] %vm287_vm2, %v1833_v0 }
0x10aa   :  { %3139 = vmatpush3.msra.mxu1 %v3805_v46  ;;  %3146 = vmatprep.mubr.msk.f32.mxu1 %vm3572_vm1, %v3571_v6 }
0x10ab   :  { %3140 = vmatprep.subr.mxu1 %v3571_v6 }
0x10ac   :  { %3141 = vmatpush3.msra.mxu1 %v3809_v48 }
0x10ad   :  { %3142 = vmatprep.subr.mxu1 %v3571_v6 }
0x10ae   :  { %3143 = vmatpush3.msra.mxu1 %v3815_v49 }
0x10af   :  { %3144 = vmatprep.subr.mxu1 %v3571_v6 }
0x10b0   :  { %3145 = vmatpush3.msra.mxu1 %v3821_v50  ;;  %v2501_v57 = vld [vmem:[#allocation2 + $0x20] sm:$0xff] }
0x10b1   :  { %3147 = vmatmul.mubr.msk.f32.vlgmr.msra.gmra.mxu1 %vm287_vm2, %v1833_v0  ;;  %3160 = vmatprep.subr.mxu1 %v3571_v6  ;;  %v2509_v52 = vmax.f32 %v2501_v57, 0.0 }
0x10b2   :  { %3161 = vmatpush3.msra.mxu1 %v3768_v37  ;;  %3168 = vmatprep.mubr.msk.f32.mxu1 %vm3572_vm1, %v3571_v6  ;;  %v4137_v37 = vld [vmem:[#allocation6] ss:$0 sm:$0xff] }
0x10b3   :  { %3162 = vmatprep.subr.mxu1 %v3571_v6  ;;  %v273_v49 = vadd.f32 %v4137_v37, %v3756_v20  ;;  %v278_v0 = vadd.f32 %v4137_v37, %v3752_v17 }
0x10b4   :  { %3163 = vmatpush3.msra.mxu1 %v3781_v40 }
0x10b5   :  { %3164 = vmatprep.subr.mxu1 %v3571_v6 }
0x10b6   :  { %3165 = vmatpush3.msra.mxu1 %v3788_v41 }
0x10b7   :  { %3166 = vmatprep.subr.mxu1 %v3571_v6 }
0x10b8   :  { %3167 = vmatpush3.msra.mxu1 %v3797_v42 }
0x10b9   :  { %3182 = vmatprep.subr.mxu1 %v3571_v6 }
0x1161   :  { %v1730_v46 = vpop.f32.mrf.mxu1 }
0x1162   :  { %v1731_v53 = vadd.f32 %v3852_v60, %v1730_v46 }
0x1163   :  { %v3104_v48 = vpop.f32.mrf.mxu1 }
0x1169   :  { %v1902_v50 = vpop.f32.mrf.mxu1 }
0x116a   :  { %v1906_v1 = vadd.f32 %v1902_v50, %v273_v49  ;;  %v4209_v50 = vld [vmem:[#allocation9] ss:$0 sm:$0xff] }
0x116b   :  { %v3126_v40 = vpop.f32.mrf.mxu1 }
0x116c   :  { %3321 = vtanh.f32 %v1906_v1  ;;  %v2751_v7 = vmul.f32 -1.442695, %v1906_v1 }
0x1171   :  { %v2074_v41 = vpop.f32.mrf.mxu1 }
0x1172   :  { %v2078_v2 = vadd.f32 %v2074_v41, %v1731_v53 }
0x1173   :  { %v3148_v3 = vpop.f32.mrf.mxu1 }
0x1174   :  { %3323 = vtanh.f32 %v2078_v2  ;;  %v2754_v8 = vmul.f32 -1.442695, %v2078_v2  ;;  %v4215_v2 = vld [vmem:[%s4287_s10] ss:$0 sm:$0xff]  ;;  %s3575_s10 = smov 96  }
0x1175   :  { %3325 = vpow2.f32 %v2751_v7 }
0x1176   :  { %3327 = vpow2.f32 %v2754_v8 }
0x1179   :  { %v3322_v42 = vpop.eup %3321 }
0x117a   :  { %1916 = vrot.lane.b32.xlu0 %v3322_v42, %s3573_s20 }
0x1181   :  { %v3324_v5 = vpop.eup %3323 }
0x1182   :  { %2088 = vrot.lane.b32.xlu1 %v3324_v5, %s3573_s20  ;;  %v3326_v20 = vpop.eup %3325 }
0x1183   :  { %v1910_v10 = vadd.f32 1.0, %v3326_v20  ;;  %v3328_v13 = vpop.eup %3327 }
0x1184   :  { %v2082_v16 = vadd.f32 1.0, %v3328_v13 }
0x1185   :  { %3329 = vrcp.f32 %v1910_v10 }
0x1186   :  { %3331 = vrcp.f32 %v2082_v16 }
0x1192   :  { %v3330_v60 = vpop.eup %3329 }
0x1193   :  { %v3332_v11 = vpop.eup %3331  ;;  %v1914_v21 = vmul.f32 %v3330_v60, %v4072_v44  ;;  %v2515_v44 = vld [vmem:[%s4286_s9 + $0x10] sm:$0xff] }
0x1194   :  { %v2086_v24 = vmul.f32 %v3332_v11, %v4076_v47  ;;  %v2498_v47 = vld [vmem:[#allocation2 + $0x8] sm:$0xff] }
0x1195   :  { %v2506_v54 = vmax.f32 %v2498_v47, 0.0 }
0x11ec   :  { %v1917_v4 = vpop.permute.xlu0 %1916 }
0x11ed   :  { %v1919_v9 = vmul.f32 %v3330_v60, %v1917_v4 }
0x11ef   :  { %1921 = vrot.lane.b32.xlu0 %v1919_v9, %s3574_s7 }
0x11f4   :  { %v2089_v12 = vpop.permute.xlu1 %2088 }
0x11f5   :  { %v2091_v18 = vmul.f32 %v3332_v11, %v2089_v12 }
0x11f7   :  { %2093 = vrot.lane.b32.xlu1 %v2091_v18, %s3574_s7 }
0x1261   :  { %v1922_v22 = vpop.permute.xlu0 %1921 }
0x1262   :  { %v4147_v23 = vadd.f32 %v1922_v22, %v1914_v21 }
0x1264   :  { %3333 = vtanh.f32 %v4147_v23 }
0x1269   :  { %v2094_v25 = vpop.permute.xlu1 %2093 }
0x126a   :  { %v4151_v26 = vadd.f32 %v2094_v25, %v2086_v24 }
0x126c   :  { %3335 = vtanh.f32 %v4151_v26 }
0x1271   :  { %v3334_v27 = vpop.eup %3333 }
0x1272   :  { %1927 = vrot.lane.b32.xlu0 %v3334_v27, %s3573_s20 }
0x1279   :  { %v3336_v29 = vpop.eup %3335 }
0x127a   :  { %2099 = vrot.lane.b32.xlu1 %v3336_v29, %s3573_s20 }
0x12e4   :  { %v1928_v30 = vpop.permute.xlu0 %1927 }
0x12e5   :  { %v1930_v14 = vmul.f32 %v3330_v60, %v1928_v30 }
0x12e7   :  { %1932 = vrot.lane.b32.xlu0 %v1930_v14, %s3574_s7 }
0x12ec   :  { %v2100_v19 = vpop.permute.xlu1 %2099 }
0x12ed   :  { %v2102_v28 = vmul.f32 %v3332_v11, %v2100_v19 }
0x12ef   :  { %2104 = vrot.lane.b32.xlu1 %v2102_v28, %s3574_s7 }
0x1359   :  { %v1933_v31 = vpop.permute.xlu0 %1932 }
0x135a   :  { %3136 = vmatmul.mubr.msk.f32.vlgmr.msra.gmra.mxu0 %vm287_vm2, %v1933_v31 }
0x135b   :  { %3150 = vmatpush3.msra.mxu0 %v4087_v59  ;;  %3157 = vmatprep.mubr.msk.f32.mxu0 %vm3572_vm1, %v3571_v6 }
0x135c   :  { %3151 = vmatprep.subr.mxu0 %v3571_v6 }
0x135d   :  { %3152 = vmatpush3.msra.mxu0 %v4096_v61 }
0x135e   :  { %3153 = vmatprep.subr.mxu0 %v3571_v6 }
0x135f   :  { %3154 = vmatpush3.msra.mxu0 %v4103_v62 }
0x1360   :  { %3155 = vmatprep.subr.mxu0 %v3571_v6 }
0x1361   :  { %3156 = vmatpush3.msra.mxu0 %v4110_v63  ;;  %v2105_v33 = vpop.permute.xlu1 %2104 }
0x1362   :  { %3158 = vmatmul.mubr.msk.f32.vlgmr.msra.gmra.mxu0 %vm287_vm2, %v1933_v31  ;;  %3171 = vmatprep.subr.mxu0 %v3571_v6  ;;  %2107 = vst.msk [vmem:[#allocation2 + $0x28] sm:$0xff] %vm287_vm2, %v2105_v33 }
0x1363   :  { %3172 = vmatpush3.msra.mxu0 %v4171_v32  ;;  %3179 = vmatprep.mubr.msk.f32.mxu0 %vm3572_vm1, %v3571_v6 }
0x1364   :  { %3173 = vmatprep.subr.mxu0 %v3571_v6 }
0x1365   :  { %3174 = vmatpush3.msra.mxu0 %v4177_v34 }
0x1366   :  { %3175 = vmatprep.subr.mxu0 %v3571_v6 }
0x1367   :  { %3176 = vmatpush3.msra.mxu0 %v4181_v36 }
0x1368   :  { %3177 = vmatprep.subr.mxu0 %v3571_v6 }
0x1369   :  { %3178 = vmatpush3.msra.mxu0 %v4188_v39  ;;  %v2502_v59 = vld [vmem:[#allocation2 + $0x28] sm:$0xff] }
0x136a   :  { %3180 = vmatmul.mubr.msk.f32.vlgmr.msra.gmra.mxu0 %vm287_vm2, %v2105_v33  ;;  %3193 = vmatprep.subr.mxu0 %v2516_v38  ;;  %v2510_v61 = vmax.f32 %v2502_v59, 0.0 }
0x136b   :  { %3194 = vmatpush3.msra.mxu0 %v2516_v38  ;;  %3201 = vmatprep.mubr.msk.f32.mxu0 %vm287_vm2, %v2505_v43 }
0x136c   :  { %3195 = vmatprep.subr.mxu0 %v2515_v44 }
0x136d   :  { %3196 = vmatpush3.msra.mxu0 %v2515_v44 }
0x136e   :  { %3197 = vmatprep.subr.mxu0 %v2514_v45 }
0x136f   :  { %3198 = vmatpush3.msra.mxu0 %v2514_v45 }
0x1370   :  { %3199 = vmatprep.subr.mxu0 %v2513_v15 }
0x1371   :  { %3200 = vmatpush3.msra.mxu0 %v2513_v15 }
0x1372   :  { %3202 = vmatmul.mubr.msk.f32.vlgmr.msra.gmra.mxu0 %vm287_vm2, %v2506_v54 }
0x1373   :  { %3204 = vmatprep.mubr.msk.f32.mxu0 %vm287_vm2, %v2507_v55 }
0x1376   :  { %3205 = vmatmul.mubr.msk.f32.gmra.mxu0 %vm287_vm2, %v2508_v58 }
0x1377   :  { %3207 = vmatprep.mubr.msk.f32.mxu0 %vm287_vm2, %v2509_v52 }
0x137a   :  { %3208 = vmatmul.mubr.msk.f32.gmra.mxu0 %vm287_vm2, %v2510_v61 }
0x141a   :  { %v2002_v62 = vpop.f32.mrf.mxu0 }
0x141b   :  { %v2003_v1 = vadd.f32 %v4209_v50, %v2002_v62 }
0x141c   :  { %v3137_v63 = vpop.f32.mrf.mxu0 }
0x1422   :  { %v2174_v46 = vpop.f32.mrf.mxu0 }
0x1423   :  { %v2178_v48 = vadd.f32 %v2174_v46, %v278_v0 }
0x1424   :  { %v3159_v49 = vpop.f32.mrf.mxu0 }
0x1425   :  { %3337 = vtanh.f32 %v2178_v48  ;;  %v2756_v11 = vmul.f32 -1.442695, %v2178_v48 }
0x142a   :  { %v2346_v40 = vpop.f32.mrf.mxu0 }
0x142b   :  { %v2350_v53 = vadd.f32 %v2346_v40, %v2003_v1 }
0x142c   :  { %v3181_v41 = vpop.f32.mrf.mxu0 }
0x142d   :  { %3339 = vtanh.f32 %v2350_v53  ;;  %v2759_v12 = vmul.f32 -1.442695, %v2350_v53 }
0x142e   :  { %3341 = vpow2.f32 %v2756_v11 }
0x142f   :  { %3343 = vpow2.f32 %v2759_v12 }
0x1432   :  { %v3338_v3 = vpop.eup %3337  ;;  %v3203_v42 = vpop.f32.mrf.mxu0 }
0x1433   :  { %v2620_v17 = vadd.f32 %v3203_v42, %v4215_v2  ;;  %2188 = vrot.lane.b32.xlu0 %v3338_v3, %s3573_s20 }
0x1434   :  { %v2614_v37 = vpop.f32.mrf.mxu0 }
0x1435   :  { %2654 = vst [vmem:[#allocation14 + $0x8] sm:$0xff] %v2620_v17  ;;  %v2615_v5 = vadd.f32 %v4215_v2, %v2614_v37 }
0x1436   :  { %v3206_v7 = vpop.f32.mrf.mxu0 }
0x1437   :  { %2653 = vst [vmem:[#allocation14] sm:$0xff] %v2615_v5  ;;  %v2630_v8 = vadd.f32 %v3206_v7, %v4215_v2 }
0x1438   :  { %v2624_v20 = vpop.f32.mrf.mxu0 }
0x1439   :  { %2656 = vst [vmem:[#allocation14 + $0x18] sm:$0xff] %v2630_v8  ;;  %v2625_v10 = vadd.f32 %v4215_v2, %v2624_v20 }
0x143a   :  { %v3340_v13 = vpop.eup %3339  ;;  %v3209_v16 = vpop.f32.mrf.mxu0 }
0x143b   :  { %2655 = vst [vmem:[#allocation14 + $0x10] sm:$0xff] %v2625_v10  ;;  %v2640_v60 = vadd.f32 %v3209_v16, %v4215_v2  ;;  %2360 = vrot.lane.b32.xlu1 %v3340_v13, %s3573_s20  ;;  %v3342_v18 = vpop.eup %3341 }
0x143c   :  { %v2634_v4 = vpop.f32.mrf.mxu0  ;;  %v2182_v21 = vadd.f32 1.0, %v3342_v18  ;;  %v3344_v22 = vpop.eup %3343 }
0x143d   :  { %2658 = vst [vmem:[#allocation14 + $0x28] sm:$0xff] %v2640_v60  ;;  %v2635_v9 = vadd.f32 %v4215_v2, %v2634_v4  ;;  %v2354_v24 = vadd.f32 1.0, %v3344_v22 }
0x143e   :  { %3345 = vrcp.f32 %v2182_v21 }
0x143f   :  { %2657 = vst [vmem:[#allocation14 + $0x20] sm:$0xff] %v2635_v9  ;;  %3347 = vrcp.f32 %v2354_v24 }
0x144b   :  { %v3346_v25 = vpop.eup %3345 }
0x144c   :  { %v3348_v30 = vpop.eup %3347  ;;  %v2186_v28 = vmul.f32 %v3346_v25, %v4147_v23 }
0x144d   :  { %v2358_v35 = vmul.f32 %v3348_v30, %v4151_v26 }
0x14a5   :  { %v2189_v27 = vpop.permute.xlu0 %2188 }
0x14a6   :  { %v2191_v29 = vmul.f32 %v3346_v25, %v2189_v27 }
0x14a8   :  { %2193 = vrot.lane.b32.xlu0 %v2191_v29, %s3574_s7 }
0x14ad   :  { %v2361_v14 = vpop.permute.xlu1 %2360 }
0x14ae   :  { %v2363_v19 = vmul.f32 %v3348_v30, %v2361_v14 }
0x14b0   :  { %2365 = vrot.lane.b32.xlu1 %v2363_v19, %s3574_s7 }
0x151a   :  { %v2194_v31 = vpop.permute.xlu0 %2193 }
0x151b   :  { %v2196_v33 = vadd.f32 %v2194_v31, %v2186_v28 }
0x151d   :  { %3349 = vtanh.f32 %v2196_v33 }
0x1522   :  { %v2366_v38 = vpop.permute.xlu1 %2365 }
0x1523   :  { %v2368_v43 = vadd.f32 %v2366_v38, %v2358_v35 }
0x1525   :  { %3351 = vtanh.f32 %v2368_v43 }
0x152a   :  { %v3350_v44 = vpop.eup %3349 }
0x152b   :  { %2199 = vrot.lane.b32.xlu0 %v3350_v44, %s3573_s20 }
0x1532   :  { %v3352_v45 = vpop.eup %3351 }
0x1533   :  { %2371 = vrot.lane.b32.xlu1 %v3352_v45, %s3573_s20 }
0x159d   :  { %v2200_v15 = vpop.permute.xlu0 %2199 }
0x159e   :  { %v2202_v47 = vmul.f32 %v3346_v25, %v2200_v15 }
0x15a0   :  { %2204 = vrot.lane.b32.xlu0 %v2202_v47, %s3574_s7 }
0x15a5   :  { %v2372_v51 = vpop.permute.xlu1 %2371 }
0x15a6   :  { %v2374_v23 = vmul.f32 %v3348_v30, %v2372_v51 }
0x15a8   :  { %2376 = vrot.lane.b32.xlu1 %v2374_v23, %s3574_s7 }
0x1612   :  { %v2205_v54 = vpop.permute.xlu0 %2204 }
0x1613   :  { %2483 = vst.msk [vmem:[#allocation15] sm:$0xff] %vm287_vm2, %v2205_v54  ;;  %3169 = vmatmul.mubr.msk.f32.vlgmr.msra.gmra.mxu1 %vm287_vm2, %v2205_v54 }
0x1614   :  { %3183 = vmatpush3.msra.mxu1 %v4171_v32  ;;  %3190 = vmatprep.mubr.msk.f32.mxu1 %vm3572_vm1, %v3571_v6 }
0x1615   :  { %3184 = vmatprep.subr.mxu1 %v3571_v6 }
0x1616   :  { %3185 = vmatpush3.msra.mxu1 %v4177_v34 }
0x1617   :  { %3186 = vmatprep.subr.mxu1 %v3571_v6 }
0x1618   :  { %3187 = vmatpush3.msra.mxu1 %v4181_v36 }
0x1619   :  { %3188 = vmatprep.subr.mxu1 %v3571_v6 }
0x161a   :  { %3189 = vmatpush3.msra.mxu1 %v4188_v39  ;;  %v2377_v26 = vpop.permute.xlu1 %2376 }
0x161b   :  { %2379 = vst.msk [vmem:[#allocation2 + $0x30] sm:$0xff] %vm287_vm2, %v2377_v26  ;;  %3191 = vmatmul.mubr.msk.f32.vlgmr.msra.gmra.mxu1 %vm287_vm2, %v2377_v26 }
0x1622   :  { %v2503_v32 = vld [vmem:[#allocation2 + $0x30] sm:$0xff] }
0x1623   :  { %v2511_v55 = vmax.f32 %v2503_v32, 0.0 }
0x1625   :  { %3210 = vmatprep.mubr.msk.f32.mxu0 %vm287_vm2, %v2511_v55 }
0x16d3   :  { %v2274_v56 = vpop.f32.mrf.mxu1 }
0x16d4   :  { %v2275_v34 = vadd.f32 %v4209_v50, %v2274_v56 }
0x16d5   :  { %v3170_v57 = vpop.f32.mrf.mxu1 }
0x16db   :  { %v2448_v58 = vpop.f32.mrf.mxu1 }
0x16dc   :  { %v2452_v52 = vadd.f32 %v2448_v58, %v2275_v34 }
0x16dd   :  { %v3192_v36 = vpop.f32.mrf.mxu1 }
0x16de   :  { %3353 = vtanh.f32 %v2452_v52  ;;  %v2761_v39 = vmul.f32 -1.442695, %v2452_v52 }
0x16e0   :  { %3355 = vpow2.f32 %v2761_v39 }
0x16eb   :  { %v3354_v6 = vpop.eup %3353 }
0x16ec   :  { %2462 = vrot.lane.b32.xlu0 %v3354_v6, %s3573_s20 }
0x16ed   :  { %v3356_v59 = vpop.eup %3355 }
0x16ee   :  { %v2456_v61 = vadd.f32 1.0, %v3356_v59 }
0x16f0   :  { %3357 = vrcp.f32 %v2456_v61 }
0x16fd   :  { %v3358_v62 = vpop.eup %3357 }
0x16fe   :  { %v2460_v46 = vmul.f32 %v3358_v62, %v2368_v43 }
0x175e   :  { %v2463_v63 = vpop.permute.xlu0 %2462 }
0x175f   :  { %v2465_v0 = vmul.f32 %v3358_v62, %v2463_v63 }
0x1761   :  { %2467 = vrot.lane.b32.xlu1 %v2465_v0, %s3574_s7 }
0x17d3   :  { %v2468_v48 = vpop.permute.xlu1 %2467 }
0x17d4   :  { %v2470_v49 = vadd.f32 %v2468_v48, %v2460_v46 }
0x17d6   :  { %3359 = vtanh.f32 %v2470_v49 }
0x17e3   :  { %v3360_v50 = vpop.eup %3359 }
0x17e4   :  { %2473 = vrot.lane.b32.xlu0 %v3360_v50, %s3573_s20  ;;  %s3576_s20 = smov [#allocation15]  }
0x17e5   :  { %s2678_s27 = sshll.u32 %s3576_s20, 4  ;;  %s2679_s27 = int_to_ptr.vmem [resolvable:$true] %s2678_s27 }
0x17e6   :  { %p3496_p3 = scmp.lt.s32.totalorder %s2679_s27, %s2679_s27 }
0x17e8   :  { %2485 = vrot.lane.b32.xlu0 %v2196_v33, %s3575_s10 }
0x1856   :  { %v2474_v1 = vpop.permute.xlu0 %2473 }
0x1857   :  { %v2476_v40 = vmul.f32 %v3358_v62, %v2474_v1 }
0x1859   :  { %2478 = vrot.lane.b32.xlu1 %v2476_v40, %s3574_s7  ;;  %s3491_s7 = scalar_lea.vmem %s2679_s27, 256 }
0x185a   :  { %v2486_v53 = vpop.permute.xlu0 %2485  ;;  %p3492_p2 = scmp.ne.s32.totalorder %s2679_s27, %s3491_s7  ;;  %p3497_p4 = scmp.lt.s32.totalorder %s3491_s7, %s3491_s7 }
0x185b   :  { %2488 = vst.msk [vmem:[#allocation17] sm:$0xff] %vm287_vm2, %v2486_v53 }
0x185c   :  { %p3498_p5 = por %p3497_p4, %p3496_p3 }
0x185d   :  { %2492 = vrot.lane.b32.xlu1 %v2470_v49, %s3575_s10 }
0x185e   :  { %p3499_p6 = pnand %p3498_p5, %p3492_p2 }
0x18cb   :  { %v2479_v41 = vpop.permute.xlu1 %2478 }
0x18cc   :  { %2481 = vst.msk [vmem:[#allocation2 + $0x38] sm:$0xff] %vm287_vm2, %v2479_v41  ;;  %2490 = vst.msk [vmem:[#allocation15 + $0x8] sm:$0xff] %vm287_vm2, %v2479_v41 }
0x18cf   :  { %v2493_v3 = vpop.permute.xlu1 %2492 }
0x18d0   :  { %2496 = vst.msk [vmem:[#allocation17 + $0x8] sm:$0xff] %vm287_vm2, %v2493_v3 }
0x18d3   :  { %v2504_v42 = vld [vmem:[#allocation2 + $0x38] sm:$0xff] }
0x18d4   :  { %v2512_v17 = vmax.f32 %v2504_v42, 0.0 }
0x18d6   :  { %3211 = vmatmul.mubr.msk.f32.gmra.mxu0 %vm287_vm2, %v2512_v17 }
0x18d7   :  { %3502 = shalt.err (!%p3499_p6)
}
0x18d8   :  { %2684 = dma.vmem_to_hbm [thread:$0]  %s2679_s27, 256, %s4289_s12, [#allocation16], %s3566_s3, %s3566_s3, %s3567_s23  }
0x18d9   :  { %s3577_s0 = smov [#allocation17]  }
0x18da   :  { %s2690_s30 = sshll.u32 %s3577_s0, 4  ;;  %s2691_s30 = int_to_ptr.vmem [resolvable:$true] %s2690_s30 }
0x18db   :  { %s3511_s4 = scalar_lea.vmem %s2691_s30, 256  ;;  %p3516_p8 = scmp.lt.s32.totalorder %s2691_s30, %s2691_s30 }
0x18dc   :  { %p3512_p7 = scmp.ne.s32.totalorder %s2691_s30, %s3511_s4  ;;  %p3517_p9 = scmp.lt.s32.totalorder %s3511_s4, %s3511_s4 }
0x18de   :  { %p3518_p10 = por %p3517_p9, %p3516_p8 }
0x18e0   :  { %p3519_p11 = pnand %p3518_p10, %p3512_p7 }
0x18e2   :  { %3522 = shalt.err (!%p3519_p11)
}
0x18e3   :  { %2696 = dma.vmem_to_hbm [thread:$0]  %s2691_s30, 256, %s4290_s13, [#allocation16], %s3566_s3, %s3566_s3, %s3567_s23  }
0x18e4   :  { %s3578_s15 = smov [#allocation14]  }
0x18e5   :  { %s2666_s12 = sshll.u32 %s3578_s15, 4  ;;  %s2667_s12 = int_to_ptr.vmem [resolvable:$true] %s2666_s12 }
0x18e6   :  { %s3531_s16 = scalar_lea.vmem %s2667_s12, 1024  ;;  %p3536_p13 = scmp.lt.s32.totalorder %s2667_s12, %s2667_s12 }
0x18e7   :  { %p3532_p12 = scmp.ne.s32.totalorder %s2667_s12, %s3531_s16  ;;  %p3537_p0 = scmp.lt.s32.totalorder %s3531_s16, %s3531_s16 }
0x18e9   :  { %p3538_p1 = por %p3537_p0, %p3536_p13 }
0x18eb   :  { %p3539_p2 = pnand %p3538_p1, %p3532_p12 }
0x1996   :  { %v3212_v37 = vpop.f32.mrf.mxu0 }
0x1997   :  { %v2650_v5 = vadd.f32 %v3212_v37, %v4215_v2 }
0x1998   :  { %v2644_v7 = vpop.f32.mrf.mxu0 }
0x1999   :  { %2660 = vst [vmem:[#allocation14 + $0x38] sm:$0xff] %v2650_v5  ;;  %v2645_v8 = vadd.f32 %v4215_v2, %v2644_v7 }
0x199b   :  { %2659 = vst [vmem:[#allocation14 + $0x30] sm:$0xff] %v2645_v8 }
0x199c   :  { %3542 = shalt.err (!%p3539_p2)
}
0x199d   :  { %2672 = dma.vmem_to_hbm [thread:$0]  %s2667_s12, 1024, %s4288_s11, [#allocation5], %s3566_s3, %s3566_s3, %s3567_s23  }
0x199e   :  { %3559 = dma.done.wait [#allocation5], 1024  }
0x199f   :  { %3560 = vsyncadd [#allocation5], 4294966272 }
0x19a0   :  { %3561 = dma.done.wait [#allocation16], 512  }
0x19a1   :  { %3562 = vsyncadd [#allocation16], 4294966784 }
0x19a2   :  { %2706 = vsyncpa [#allocation4], 1 }
0x19a3   :  { %2707 = vsyncpa [#allocation7], 1 }
0x19a4   :  { %2708 = vsyncpa [#allocation10], 1 }
0x19a5   :  { %2709 = vsyncpa [#allocation13], 1 }
0x19a6   :  { %2710 = vsyncpa [#allocation5], 1 }
0x19a7   :  { %2711 = vsyncpa [#allocation16], 1 }

</bundles_post_ra>
